<compile_context>
chip_gen: v7x
topology: tpu7x:2x2x1
jax: 0.10.0
libtpu: 0.0.40
codegen_flags: <defaults>
</compile_context>

<pallas_src>
import jax
import jax.numpy as jnp
from jax.experimental import pallas as pl
from jax.experimental.pallas import tpu as pltpu

# ---------------- toy sizes consistent with the module ----------------
B = 4            # logical batch
ANGLE = 4        # angle_feat_size
EMB = 16         # embedding_size
H = 32           # hidden_size   (4*H = 128 -> lane-dense gate width)
FEAT = 64        # feature_size  (stands in for 2048+4)
V = 16           # panoramic views (stands in for 36)
C = 8            # candidates
S = 8            # instruction sequence length
T = 6            # decode steps fused into one pallas_call

B_BLK = 8        # batch rows per grid block (one full sublane group)
OUT_W = 4 * H    # lane-dense packed output width (128)
NEG_INF = -1e30  # additive mask value (exp underflows to exactly 0)

assert 3 * H + C <= OUT_W

# LSTM slab row offsets: [W_ih(emb rows) ; W_ih(feat rows) ; W_hh ; (b_ih+b_hh) ; pad]
_LSTM_E0, _LSTM_F0, _LSTM_H0, _LSTM_B0 = 0, EMB, EMB + FEAT, EMB + FEAT + H
_LSTM_ROWS = ((EMB + FEAT + H + 1 + 7) // 8) * 8   # 120 (sublane-aligned)


def _decoder_kernel(
    # per-step / per-rollout inputs
    action_ref, feature_ref, cand_ref, state0_ref, ctx_ref, mask_ref,
    # resident packed parameter slabs
    emb_ref, lstm_ref, attn_ref, featw_ref,
    # packed lane-dense output
    out_ref,
    # carried recurrent state
    h_st, c_st,
):
    f32 = jnp.float32
    t = pl.program_id(1)

    # Seed the carried (h, c) state on the first fused step of each batch block.
    @pl.when(t == 0)
    def _():
        h_st[...] = state0_ref[0]
        c_st[...] = state0_ref[1]

    prev_h1 = h_st[...]
    c_0 = c_st[...]

    # 1) action embedding: tanh(Linear(action))            (Dropout == identity)
    action_embeds = jnp.tanh(
        jnp.dot(action_ref[...], emb_ref[0:ANGLE, :], preferred_element_type=f32)
        + emb_ref[ANGLE:ANGLE + 1, :]
    )

    # 2) feat_att_layer: SoftDotAttention(H, FEAT), output_tilde=False, no mask.
    #    NOTE: at real V/FEAT these broadcast-mul reductions become batched MXU
    #    dot_generals on bf16 inputs; at toy sizes the VPU/XLU form is cheaper.
    feature = feature_ref[...]                                               # (B_BLK, V, FEAT)
    tgt_f = jnp.dot(prev_h1, featw_ref[0:H, :], preferred_element_type=f32)  # (B_BLK, FEAT)
    attn_f = jnp.sum(feature * tgt_f[:, None, :], axis=-1)                   # (B_BLK, V)
    attn_f = attn_f - jnp.max(attn_f, axis=-1, keepdims=True)
    p_f = jnp.exp(attn_f)
    p_f = p_f * pl.reciprocal(jnp.sum(p_f, axis=-1, keepdims=True), approx=True)
    attn_feat = jnp.sum(p_f[:, :, None] * feature, axis=1)                   # (B_BLK, FEAT)

    # 3) LSTMCell on concat([action_embeds, attn_feat]) with state (prev_h1, c_0).
    #    The concat is avoided by splitting W_ih into its row blocks; b_ih + b_hh
    #    was pre-summed into a single slab row.
    gates = (
        jnp.dot(action_embeds, lstm_ref[_LSTM_E0:_LSTM_F0, :], preferred_element_type=f32)
        + jnp.dot(attn_feat, lstm_ref[_LSTM_F0:_LSTM_H0, :], preferred_element_type=f32)
        + jnp.dot(prev_h1, lstm_ref[_LSTM_H0:_LSTM_B0, :], preferred_element_type=f32)
        + lstm_ref[_LSTM_B0:_LSTM_B0 + 1, :]
    )                                                                        # (B_BLK, 4H)
    sig = jax.nn.sigmoid(gates)     # one full-vreg EUP pass (i, f, o used)
    tnh = jnp.tanh(gates)           # one full-vreg EUP pass (g used)
    i_g = sig[:, 0:H]
    f_g = sig[:, H:2 * H]
    o_g = sig[:, 3 * H:4 * H]
    g_g = tnh[:, 2 * H:3 * H]
    c_1 = f_g * c_0 + i_g * g_g
    h_1 = o_g * jnp.tanh(c_1)

    # 4) attention_layer: SoftDotAttention(H, H) over ctx, additive mask, output_tilde=True.
    ctx = ctx_ref[...]                                                       # (B_BLK, S, H)
    tgt_c = jnp.dot(h_1, attn_ref[0:H, :], preferred_element_type=f32)       # (B_BLK, H)
    attn_c = jnp.sum(ctx * tgt_c[:, None, :], axis=-1) + mask_ref[...]       # (B_BLK, S)
    attn_c = attn_c - jnp.max(attn_c, axis=-1, keepdims=True)
    p_c = jnp.exp(attn_c)
    p_c = p_c * pl.reciprocal(jnp.sum(p_c, axis=-1, keepdims=True), approx=True)
    wctx = jnp.sum(p_c[:, :, None] * ctx, axis=1)                            # (B_BLK, H)
    # linear_out on cat([wctx, h_1]) -> two row blocks of the packed attention slab
    h_tilde = jnp.tanh(
        jnp.dot(wctx, attn_ref[H:2 * H, :], preferred_element_type=f32)
        + jnp.dot(h_1, attn_ref[2 * H:3 * H, :], preferred_element_type=f32)
    )

    # 5) candidate_att_layer: output_prob=False -> pre-softmax logits only.
    tgt_cd = jnp.dot(h_tilde, featw_ref[H:2 * H, :], preferred_element_type=f32)  # (B_BLK, FEAT)
    logit = jnp.sum(cand_ref[...] * tgt_cd[:, None, :], axis=-1)                  # (B_BLK, C)

    # Carry the recurrent state to the next fused step.
    h_st[...] = h_1
    c_st[...] = c_1

    # Single lane-dense store: [h_1 | c_1 | h_tilde | logit | zero pad] = (B_BLK, 128).
    pad = jnp.zeros((h_1.shape[0], OUT_W - 3 * H - C), dtype=f32)
    out_ref[...] = jnp.concatenate([h_1, c_1, h_tilde, logit, pad], axis=-1)


def pack_params(emb_w, emb_b, w_ih_e, w_ih_f, b_ih, w_hh, b_hh,
                w_feat_in, w_attn_in, w_out_ctx, w_out_h, w_cand_in):
    """Pack the 12 (pre-transposed) parameters into 4 resident, aligned slabs."""
    emb_slab = jnp.zeros((8, EMB), jnp.float32)
    emb_slab = emb_slab.at[0:ANGLE, :].set(emb_w)
    emb_slab = emb_slab.at[ANGLE:ANGLE + 1, :].set(emb_b.reshape(1, EMB))

    lstm_slab = jnp.zeros((_LSTM_ROWS, 4 * H), jnp.float32)
    lstm_slab = lstm_slab.at[_LSTM_E0:_LSTM_F0, :].set(w_ih_e)
    lstm_slab = lstm_slab.at[_LSTM_F0:_LSTM_H0, :].set(w_ih_f)
    lstm_slab = lstm_slab.at[_LSTM_H0:_LSTM_B0, :].set(w_hh)
    lstm_slab = lstm_slab.at[_LSTM_B0:_LSTM_B0 + 1, :].set((b_ih + b_hh).reshape(1, 4 * H))

    attn_slab = jnp.concatenate([w_attn_in, w_out_ctx, w_out_h], axis=0)     # (3H, H)
    feat_slab = jnp.concatenate([w_feat_in, w_cand_in], axis=0)              # (2H, FEAT)
    return emb_slab, lstm_slab, attn_slab, feat_slab


def attn_decoder_lstm_unrolled(actions, features, cand_feats, prev_h1, c_0,
                               ctx, ctx_mask, packed_params):
    """Fused T-step decode. actions: (T,B,ANGLE), features: (T,B,V,FEAT),
    cand_feats: (T,B,C,FEAT); ctx/ctx_mask fixed for the rollout."""
    emb_slab, lstm_slab, attn_slab, feat_slab = packed_params
    t_steps, b_in = actions.shape[0], actions.shape[1]
    bp = ((b_in + B_BLK - 1) // B_BLK) * B_BLK    # pad batch to sublane multiple
    nb = bp // B_BLK

    def pad_b(x, axis):
        if bp == b_in:
            return x
        widths = [(0, 0)] * x.ndim
        widths[axis] = (0, bp - b_in)
        return jnp.pad(x, widths)

    actions_p  = pad_b(actions, 1).astype(jnp.float32)
    features_p = pad_b(features, 1).astype(jnp.float32)
    cands_p    = pad_b(cand_feats, 1).astype(jnp.float32)
    ctx_p      = pad_b(ctx, 0).astype(jnp.float32)
    mask_add   = pad_b(ctx_mask, 0).astype(jnp.float32) * NEG_INF   # additive mask
    state0     = jnp.stack([pad_b(prev_h1, 0), pad_b(c_0, 0)], axis=0).astype(jnp.float32)

    in_specs = [
        pl.BlockSpec((None, B_BLK, ANGLE),   lambda b, t: (t, b, 0)),      # actions (per step)
        pl.BlockSpec((None, B_BLK, V, FEAT), lambda b, t: (t, b, 0, 0)),   # features (per step)
        pl.BlockSpec((None, B_BLK, C, FEAT), lambda b, t: (t, b, 0, 0)),   # cand feats (per step)
        pl.BlockSpec((2, B_BLK, H),          lambda b, t: (0, b, 0)),      # initial (h, c)
        pl.BlockSpec((B_BLK, S, H),          lambda b, t: (b, 0, 0)),      # ctx (resident per b)
        pl.BlockSpec((B_BLK, S),             lambda b, t: (b, 0)),         # additive mask
        pl.BlockSpec((8, EMB),               lambda b, t: (0, 0)),         # emb slab
        pl.BlockSpec((_LSTM_ROWS, 4 * H),    lambda b, t: (0, 0)),         # LSTM slab
        pl.BlockSpec((3 * H, H),             lambda b, t: (0, 0)),         # attention slab
        pl.BlockSpec((2 * H, FEAT),          lambda b, t: (0, 0)),         # feat/cand proj slab
    ]
    out_spec = pl.BlockSpec((None, B_BLK, OUT_W), lambda b, t: (t, b, 0))

    packed = pl.pallas_call(
        _decoder_kernel,
        out_shape=jax.ShapeDtypeStruct((t_steps, bp, OUT_W), jnp.float32),
        grid=(nb, t_steps),
        in_specs=in_specs,
        out_specs=out_spec,
        scratch_shapes=[pltpu.VMEM((B_BLK, H), jnp.float32),   # carried h
                        pltpu.VMEM((B_BLK, H), jnp.float32)],  # carried c
        compiler_params=pltpu.CompilerParams(
            dimension_semantics=("parallel", "arbitrary"),
            vmem_limit_bytes=32 * 1024 * 1024),
    )(actions_p, features_p, cands_p, state0, ctx_p, mask_add,
      emb_slab, lstm_slab, attn_slab, feat_slab)

    h1      = packed[:, :b_in, 0:H]
    c1      = packed[:, :b_in, H:2 * H]
    h_tilde = packed[:, :b_in, 2 * H:3 * H]
    logit   = packed[:, :b_in, 3 * H:3 * H + C]
    return h1, c1, logit, h_tilde


def attn_decoder_lstm(action, feature, cand_feat, h_0, prev_h1, c_0, ctx, ctx_mask,
                      packed_params):
    """Single decode step with the PyTorch forward signature (h_0 unused, as in the module;
    dropout layers are identity / eval mode)."""
    del h_0
    outs = attn_decoder_lstm_unrolled(action[None], feature[None], cand_feat[None],
                                      prev_h1, c_0, ctx, ctx_mask, packed_params)
    return tuple(o[0] for o in outs)


def _reference_step(action, feature, cand_feat, prev_h1, c_0, ctx, ctx_mask, raw_params):
    (emb_w, emb_b, w_ih_e, w_ih_f, b_ih, w_hh, b_hh,
     w_feat_in, w_attn_in, w_out_ctx, w_out_h, w_cand_in) = raw_params
    ae = jnp.tanh(action @ emb_w + emb_b)
    tgt_f = prev_h1 @ w_feat_in
    a_f = jax.nn.softmax(jnp.einsum('bvf,bf->bv', feature, tgt_f), axis=-1)
    attn_feat = jnp.einsum('bv,bvf->bf', a_f, feature)
    gates = ae @ w_ih_e + attn_feat @ w_ih_f + b_ih + prev_h1 @ w_hh + b_hh
    i_g = jax.nn.sigmoid(gates[:, 0:H]); f_g = jax.nn.sigmoid(gates[:, H:2 * H])
    g_g = jnp.tanh(gates[:, 2 * H:3 * H]); o_g = jax.nn.sigmoid(gates[:, 3 * H:4 * H])
    c_1 = f_g * c_0 + i_g * g_g
    h_1 = o_g * jnp.tanh(c_1)
    tgt_c = h_1 @ w_attn_in
    logit_c = jnp.einsum('bsh,bh->bs', ctx, tgt_c)
    logit_c = jnp.where(ctx_mask > 0.5, NEG_INF, logit_c)
    a_c = jax.nn.softmax(logit_c, axis=-1)
    wctx = jnp.einsum('bs,bsh->bh', a_c, ctx)
    h_tilde = jnp.tanh(wctx @ w_out_ctx + h_1 @ w_out_h)
    logit = jnp.einsum('bcf,bf->bc', cand_feat, h_tilde @ w_cand_in)
    return h_1, c_1, logit, h_tilde


if __name__ == "__main__":
    key = jax.random.PRNGKey(0)
    ks = jax.random.split(key, 24)

    # ---- inputs (a T-step rollout of the single-step module forward) ----
    actions  = jax.random.normal(ks[0], (T, B, ANGLE), jnp.float32)
    features = jax.random.normal(ks[1], (T, B, V, FEAT), jnp.float32)
    cands    = jax.random.normal(ks[2], (T, B, C, FEAT), jnp.float32)
    h_0      = jax.random.normal(ks[3], (B, H), jnp.float32)   # unused by forward (parity only)
    prev_h1  = jax.random.normal(ks[4], (B, H), jnp.float32)
    c_0      = jax.random.normal(ks[5], (B, H), jnp.float32)
    ctx      = jax.random.normal(ks[6], (B, S, H), jnp.float32)
    lengths  = jnp.array([S, S - 2, S - 1, S - 3], jnp.int32)
    ctx_mask = (jnp.arange(S)[None, :] >= lengths[:, None]).astype(jnp.float32)  # 1.0 = masked

    # ---- deterministic parameters (PyTorch Linear (out,in) stored pre-transposed (in,out)) ----
    def w(k, shape):
        return (jax.random.normal(k, shape, jnp.float32) * 0.1).astype(jnp.float32)

    raw_params = (
        w(ks[7],  (ANGLE, EMB)),    # embedding Linear W^T
        w(ks[8],  (1, EMB)),        # embedding bias
        w(ks[9],  (EMB, 4 * H)),    # LSTM W_ih^T rows for action_embeds
        w(ks[10], (FEAT, 4 * H)),   # LSTM W_ih^T rows for attn_feat
        w(ks[11], (1, 4 * H)),      # LSTM b_ih
        w(ks[12], (H, 4 * H)),      # LSTM W_hh^T
        w(ks[13], (1, 4 * H)),      # LSTM b_hh
        w(ks[14], (H, FEAT)),       # feat_att_layer.linear_in^T
        w(ks[15], (H, H)),          # attention_layer.linear_in^T
        w(ks[16], (H, H)),          # attention_layer.linear_out^T (ctx half)
        w(ks[17], (H, H)),          # attention_layer.linear_out^T (h half)
        w(ks[18], (H, FEAT)),       # candidate_att_layer.linear_in^T
    )
    packed_params = pack_params(*raw_params)

    # ---- fused multi-step decode kernel ----
    outs = attn_decoder_lstm_unrolled(actions, features, cands, prev_h1, c_0,
                                      ctx, ctx_mask, packed_params)
    outs = jax.block_until_ready(outs)

    # ---- single-step call with the module's forward signature ----
    step0 = attn_decoder_lstm(actions[0], features[0], cands[0], h_0, prev_h1, c_0,
                              ctx, ctx_mask, packed_params)
    step0 = jax.block_until_ready(step0)

    # ---- pure-JAX reference rollout ----
    refs = [[], [], [], []]
    h, c = prev_h1, c_0
    for t in range(T):
        r = _reference_step(actions[t], features[t], cands[t], h, c, ctx, ctx_mask, raw_params)
        h, c = r[0], r[1]
        for i in range(4):
            refs[i].append(r[i])
    refs = [jnp.stack(rr, axis=0) for rr in refs]

    # Tolerance loosened slightly because the two softmax denominators use the
    # EUP approximate reciprocal (pl.reciprocal(..., approx=True)).
    TOL = 1e-2
    for o, rr in zip(outs, refs):
        assert o.shape == rr.shape
        assert jnp.allclose(o, rr, atol=TOL, rtol=TOL), "mismatch vs reference (rollout)"
    ref0 = [rr[0] for rr in refs]
    for o, rr in zip(step0, ref0):
        assert o.shape == rr.shape
        assert jnp.allclose(o, rr, atol=TOL, rtol=TOL), "mismatch vs reference (single step)"

    # NOTE: if an entire ctx_mask row is masked (length 0), the additive -1e30 mask yields a
    # uniform attention row whereas PyTorch's -inf masked_fill would produce NaN (not hit here).
    print("KERNEL_OK")
</pallas_src>

<mosaic_0001>
module attributes {stable_mosaic.version = 11 : i64} {
  func.func @_decoder_kernel(%arg0: i32, %arg1: i32, %arg2: memref<1x8x4xf32, #tpu.memory_space<vmem>>, %arg3: memref<1x8x16x64xf32, #tpu.memory_space<vmem>>, %arg4: memref<1x8x8x64xf32, #tpu.memory_space<vmem>>, %arg5: memref<2x8x32xf32, #tpu.memory_space<vmem>>, %arg6: memref<8x8x32xf32, #tpu.memory_space<vmem>>, %arg7: memref<8x8xf32, #tpu.memory_space<vmem>>, %arg8: memref<8x16xf32, #tpu.memory_space<vmem>>, %arg9: memref<120x128xf32, #tpu.memory_space<vmem>>, %arg10: memref<96x32xf32, #tpu.memory_space<vmem>>, %arg11: memref<64x64xf32, #tpu.memory_space<vmem>>, %arg12: memref<1x8x128xf32, #tpu.memory_space<vmem>>, %arg13: memref<8x32xf32, #tpu.memory_space<vmem>>, %arg14: memref<8x32xf32, #tpu.memory_space<vmem>>) attributes {dimension_semantics = [#tpu.dimension_semantics<parallel>, #tpu.dimension_semantics<arbitrary>], iteration_bounds = array<i64: 1, 6>, scalar_prefetch = 0 : i64, scratch_operands = 2 : i64, tpu.core_type = #tpu.core_type<tc>, window_params = [{transform_indices = @transform_0, window_bounds = array<i64: 1, 8, 4>}, {transform_indices = @transform_1, window_bounds = array<i64: 1, 8, 16, 64>}, {transform_indices = @transform_2, window_bounds = array<i64: 1, 8, 8, 64>}, {transform_indices = @transform_3, window_bounds = array<i64: 2, 8, 32>}, {transform_indices = @transform_4, window_bounds = array<i64: 8, 8, 32>}, {transform_indices = @transform_5, window_bounds = array<i64: 8, 8>}, {pipeline_mode = #tpu.pipeline_mode<synchronous>, transform_indices = @transform_6, window_bounds = array<i64: 8, 16>}, {pipeline_mode = #tpu.pipeline_mode<synchronous>, transform_indices = @transform_7, window_bounds = array<i64: 120, 128>}, {pipeline_mode = #tpu.pipeline_mode<synchronous>, transform_indices = @transform_8, window_bounds = array<i64: 96, 32>}, {pipeline_mode = #tpu.pipeline_mode<synchronous>, transform_indices = @transform_9, window_bounds = array<i64: 64, 64>}, {transform_indices = @transform_10, window_bounds = array<i64: 1, 8, 128>}]} {
    %c0_i32 = arith.constant 0 : i32
    %0 = arith.cmpi eq, %arg1, %c0_i32 : i32
    %1 = arith.extui %0 : i1 to i32
    %c0_i32_0 = arith.constant 0 : i32
    %2 = arith.cmpi ne, %1, %c0_i32_0 : i32
    scf.if %2 {
      %c0_62 = arith.constant 0 : index
      %c0_63 = arith.constant 0 : index
      %c0_64 = arith.constant 0 : index
      %105 = vector.load %arg5[%c0_62, %c0_63, %c0_64] : memref<2x8x32xf32, #tpu.memory_space<vmem>>, vector<1x8x32xf32>
      %106 = vector.shape_cast %105 : vector<1x8x32xf32> to vector<8x32xf32>
      %c0_65 = arith.constant 0 : index
      %c0_66 = arith.constant 0 : index
      %107 = vector.load %arg13[%c0_65, %c0_66] : memref<8x32xf32, #tpu.memory_space<vmem>>, vector<8x32xf32>
      tpu.vector_store %arg13[%c0_65, %c0_66], %106 {strides = array<i32>} : memref<8x32xf32, #tpu.memory_space<vmem>>, vector<8x32xf32>,
      %c1 = arith.constant 1 : index
      %c0_67 = arith.constant 0 : index
      %c0_68 = arith.constant 0 : index
      %108 = vector.load %arg5[%c1, %c0_67, %c0_68] : memref<2x8x32xf32, #tpu.memory_space<vmem>>, vector<1x8x32xf32>
      %109 = vector.shape_cast %108 : vector<1x8x32xf32> to vector<8x32xf32>
      %c0_69 = arith.constant 0 : index
      %c0_70 = arith.constant 0 : index
      %110 = vector.load %arg14[%c0_69, %c0_70] : memref<8x32xf32, #tpu.memory_space<vmem>>, vector<8x32xf32>
      tpu.vector_store %arg14[%c0_69, %c0_70], %109 {strides = array<i32>} : memref<8x32xf32, #tpu.memory_space<vmem>>, vector<8x32xf32>,
    } else {
    }
    %c0 = arith.constant 0 : index
    %c0_1 = arith.constant 0 : index
    %3 = vector.load %arg13[%c0, %c0_1] : memref<8x32xf32, #tpu.memory_space<vmem>>, vector<8x32xf32>
    %c0_2 = arith.constant 0 : index
    %c0_3 = arith.constant 0 : index
    %4 = vector.load %arg14[%c0_2, %c0_3] : memref<8x32xf32, #tpu.memory_space<vmem>>, vector<8x32xf32>
    %c0_4 = arith.constant 0 : index
    %c0_5 = arith.constant 0 : index
    %c0_6 = arith.constant 0 : index
    %5 = vector.load %arg2[%c0_4, %c0_5, %c0_6] : memref<1x8x4xf32, #tpu.memory_space<vmem>>, vector<1x8x4xf32>
    %6 = vector.shape_cast %5 : vector<1x8x4xf32> to vector<8x4xf32>
    %c0_7 = arith.constant 0 : index
    %c0_8 = arith.constant 0 : index
    %7 = vector.load %arg8[%c0_7, %c0_8] : memref<8x16xf32, #tpu.memory_space<vmem>>, vector<4x16xf32>
    %cst = arith.constant dense<0.000000e+00> : vector<8x16xf32>
    %8 = tpu.matmul %6, %7, %cst {dimension_numbers = #tpu.dot_dimension_numbers<[1], [0], [0], [1], [0, 0, 1, 1], [], []>} : vector<8x4xf32>, vector<4x16xf32>, vector<8x16xf32> -> vector<8x16xf32>
    %c4 = arith.constant 4 : index
    %c0_9 = arith.constant 0 : index
    %9 = vector.load %arg8[%c4, %c0_9] : memref<8x16xf32, #tpu.memory_space<vmem>>, vector<1x16xf32>
    %10 = vector.broadcast %9 : vector<1x16xf32> to vector<8x16xf32>
    %11 = arith.addf %8, %10 : vector<8x16xf32>
    %12 = math.tanh %11 : vector<8x16xf32>
    %c0_10 = arith.constant 0 : index
    %c0_11 = arith.constant 0 : index
    %c0_12 = arith.constant 0 : index
    %c0_13 = arith.constant 0 : index
    %13 = vector.load %arg3[%c0_10, %c0_11, %c0_12, %c0_13] : memref<1x8x16x64xf32, #tpu.memory_space<vmem>>, vector<1x8x16x64xf32>
    %14 = vector.shape_cast %13 : vector<1x8x16x64xf32> to vector<8x16x64xf32>
    %c0_14 = arith.constant 0 : index
    %c0_15 = arith.constant 0 : index
    %15 = vector.load %arg11[%c0_14, %c0_15] : memref<64x64xf32, #tpu.memory_space<vmem>>, vector<32x64xf32>
    %cst_16 = arith.constant dense<0.000000e+00> : vector<8x64xf32>
    %16 = tpu.matmul %3, %15, %cst_16 {dimension_numbers = #tpu.dot_dimension_numbers<[1], [0], [0], [1], [0, 0, 1, 1], [], []>} : vector<8x32xf32>, vector<32x64xf32>, vector<8x64xf32> -> vector<8x64xf32>
    %17 = vector.shape_cast %16 : vector<8x64xf32> to vector<8x1x64xf32>
    %18 = vector.broadcast %17 : vector<8x1x64xf32> to vector<8x16x64xf32>
    %19 = arith.mulf %14, %18 : vector<8x16x64xf32>
    %cst_17 = arith.constant dense<0.000000e+00> : vector<8x16xf32>
    %20 = vector.multi_reduction <add>, %19, %cst_17 [2] : vector<8x16x64xf32> to vector<8x16xf32>
    %cst_18 = arith.constant dense<0xFF800000> : vector<8xf32>
    %21 = vector.multi_reduction <maximumf>, %20, %cst_18 [1] : vector<8x16xf32> to vector<8xf32>
    %22 = vector.shape_cast %21 : vector<8xf32> to vector<8x1xf32>
    %23 = vector.broadcast %22 : vector<8x1xf32> to vector<8x16xf32>
    %24 = arith.subf %20, %23 : vector<8x16xf32>
    %25 = math.exp %24 : vector<8x16xf32>
    %cst_19 = arith.constant dense<0.000000e+00> : vector<8xf32>
    %26 = vector.multi_reduction <add>, %25, %cst_19 [1] : vector<8x16xf32> to vector<8xf32>
    %27 = vector.shape_cast %26 : vector<8xf32> to vector<8x1xf32>
    %28 = tpu.reciprocal %27 {approx = true} : vector<8x1xf32> -> vector<8x1xf32>
    %29 = vector.broadcast %28 : vector<8x1xf32> to vector<8x16xf32>
    %30 = arith.mulf %25, %29 : vector<8x16xf32>
    %31 = vector.shape_cast %30 : vector<8x16xf32> to vector<8x16x1xf32>
    %32 = vector.broadcast %31 : vector<8x16x1xf32> to vector<8x16x64xf32>
    %33 = arith.mulf %32, %14 : vector<8x16x64xf32>
    %cst_20 = arith.constant dense<0.000000e+00> : vector<8x64xf32>
    %34 = vector.multi_reduction <add>, %33, %cst_20 [1] : vector<8x16x64xf32> to vector<8x64xf32>
    %c0_21 = arith.constant 0 : index
    %c0_22 = arith.constant 0 : index
    %35 = vector.load %arg9[%c0_21, %c0_22] : memref<120x128xf32, #tpu.memory_space<vmem>>, vector<16x128xf32>
    %cst_23 = arith.constant dense<0.000000e+00> : vector<8x128xf32>
    %36 = tpu.matmul %12, %35, %cst_23 {dimension_numbers = #tpu.dot_dimension_numbers<[1], [0], [0], [1], [0, 0, 1, 1], [], []>} : vector<8x16xf32>, vector<16x128xf32>, vector<8x128xf32> -> vector<8x128xf32>
    %c16 = arith.constant 16 : index
    %c0_24 = arith.constant 0 : index
    %37 = vector.load %arg9[%c16, %c0_24] : memref<120x128xf32, #tpu.memory_space<vmem>>, vector<64x128xf32>
    %cst_25 = arith.constant dense<0.000000e+00> : vector<8x128xf32>
    %38 = tpu.matmul %34, %37, %cst_25 {dimension_numbers = #tpu.dot_dimension_numbers<[1], [0], [0], [1], [0, 0, 1, 1], [], []>} : vector<8x64xf32>, vector<64x128xf32>, vector<8x128xf32> -> vector<8x128xf32>
    %39 = arith.addf %36, %38 : vector<8x128xf32>
    %c80 = arith.constant 80 : index
    %c0_26 = arith.constant 0 : index
    %40 = vector.load %arg9[%c80, %c0_26] : memref<120x128xf32, #tpu.memory_space<vmem>>, vector<32x128xf32>
    %cst_27 = arith.constant dense<0.000000e+00> : vector<8x128xf32>
    %41 = tpu.matmul %3, %40, %cst_27 {dimension_numbers = #tpu.dot_dimension_numbers<[1], [0], [0], [1], [0, 0, 1, 1], [], []>} : vector<8x32xf32>, vector<32x128xf32>, vector<8x128xf32> -> vector<8x128xf32>
    %42 = arith.addf %39, %41 : vector<8x128xf32>
    %c112 = arith.constant 112 : index
    %c0_28 = arith.constant 0 : index
    %43 = vector.load %arg9[%c112, %c0_28] : memref<120x128xf32, #tpu.memory_space<vmem>>, vector<1x128xf32>
    %44 = vector.broadcast %43 : vector<1x128xf32> to vector<8x128xf32>
    %45 = arith.addf %42, %44 : vector<8x128xf32>
    %46 = arith.negf %45 : vector<8x128xf32>
    %47 = math.exp %46 : vector<8x128xf32>
    %cst_29 = arith.constant 1.000000e+00 : f32
    %48 = vector.broadcast %cst_29 : f32 to vector<8x128xf32>
    %49 = arith.addf %48, %47 : vector<8x128xf32>
    %50 = arith.divf %48, %49 : vector<8x128xf32>
    %51 = math.tanh %45 : vector<8x128xf32>
    %52 = vector.extract_strided_slice %50 {offsets = [0, 0], sizes = [8, 32], strides = [1, 1]} : vector<8x128xf32> to vector<8x32xf32>
    %53 = vector.extract_strided_slice %50 {offsets = [0, 32], sizes = [8, 32], strides = [1, 1]} : vector<8x128xf32> to vector<8x32xf32>
    %54 = vector.extract_strided_slice %50 {offsets = [0, 96], sizes = [8, 32], strides = [1, 1]} : vector<8x128xf32> to vector<8x32xf32>
    %55 = vector.extract_strided_slice %51 {offsets = [0, 64], sizes = [8, 32], strides = [1, 1]} : vector<8x128xf32> to vector<8x32xf32>
    %56 = arith.mulf %53, %4 : vector<8x32xf32>
    %57 = arith.mulf %52, %55 : vector<8x32xf32>
    %58 = arith.addf %56, %57 : vector<8x32xf32>
    %59 = math.tanh %58 : vector<8x32xf32>
    %60 = arith.mulf %54, %59 : vector<8x32xf32>
    %c0_30 = arith.constant 0 : index
    %c0_31 = arith.constant 0 : index
    %c0_32 = arith.constant 0 : index
    %61 = vector.load %arg6[%c0_30, %c0_31, %c0_32] : memref<8x8x32xf32, #tpu.memory_space<vmem>>, vector<8x8x32xf32>
    %c0_33 = arith.constant 0 : index
    %c0_34 = arith.constant 0 : index
    %62 = vector.load %arg10[%c0_33, %c0_34] : memref<96x32xf32, #tpu.memory_space<vmem>>, vector<32x32xf32>
    %cst_35 = arith.constant dense<0.000000e+00> : vector<8x32xf32>
    %63 = tpu.matmul %60, %62, %cst_35 {dimension_numbers = #tpu.dot_dimension_numbers<[1], [0], [0], [1], [0, 0, 1, 1], [], []>} : vector<8x32xf32>, vector<32x32xf32>, vector<8x32xf32> -> vector<8x32xf32>
    %64 = vector.shape_cast %63 : vector<8x32xf32> to vector<8x1x32xf32>
    %65 = vector.broadcast %64 : vector<8x1x32xf32> to vector<8x8x32xf32>
    %66 = arith.mulf %61, %65 : vector<8x8x32xf32>
    %cst_36 = arith.constant dense<0.000000e+00> : vector<8x8xf32>
    %67 = vector.multi_reduction <add>, %66, %cst_36 [2] : vector<8x8x32xf32> to vector<8x8xf32>
    %c0_37 = arith.constant 0 : index
    %c0_38 = arith.constant 0 : index
    %68 = vector.load %arg7[%c0_37, %c0_38] : memref<8x8xf32, #tpu.memory_space<vmem>>, vector<8x8xf32>
    %69 = arith.addf %67, %68 : vector<8x8xf32>
    %cst_39 = arith.constant dense<0xFF800000> : vector<8xf32>
    %70 = vector.multi_reduction <maximumf>, %69, %cst_39 [1] : vector<8x8xf32> to vector<8xf32>
    %71 = vector.shape_cast %70 : vector<8xf32> to vector<8x1xf32>
    %72 = vector.broadcast %71 : vector<8x1xf32> to vector<8x8xf32>
    %73 = arith.subf %69, %72 : vector<8x8xf32>
    %74 = math.exp %73 : vector<8x8xf32>
    %cst_40 = arith.constant dense<0.000000e+00> : vector<8xf32>
    %75 = vector.multi_reduction <add>, %74, %cst_40 [1] : vector<8x8xf32> to vector<8xf32>
    %76 = vector.shape_cast %75 : vector<8xf32> to vector<8x1xf32>
    %77 = tpu.reciprocal %76 {approx = true} : vector<8x1xf32> -> vector<8x1xf32>
    %78 = vector.broadcast %77 : vector<8x1xf32> to vector<8x8xf32>
    %79 = arith.mulf %74, %78 : vector<8x8xf32>
    %80 = vector.shape_cast %79 : vector<8x8xf32> to vector<8x8x1xf32>
    %81 = vector.broadcast %80 : vector<8x8x1xf32> to vector<8x8x32xf32>
    %82 = arith.mulf %81, %61 : vector<8x8x32xf32>
    %cst_41 = arith.constant dense<0.000000e+00> : vector<8x32xf32>
    %83 = vector.multi_reduction <add>, %82, %cst_41 [1] : vector<8x8x32xf32> to vector<8x32xf32>
    %c32 = arith.constant 32 : index
    %c0_42 = arith.constant 0 : index
    %84 = vector.load %arg10[%c32, %c0_42] : memref<96x32xf32, #tpu.memory_space<vmem>>, vector<32x32xf32>
    %cst_43 = arith.constant dense<0.000000e+00> : vector<8x32xf32>
    %85 = tpu.matmul %83, %84, %cst_43 {dimension_numbers = #tpu.dot_dimension_numbers<[1], [0], [0], [1], [0, 0, 1, 1], [], []>} : vector<8x32xf32>, vector<32x32xf32>, vector<8x32xf32> -> vector<8x32xf32>
    %c64 = arith.constant 64 : index
    %c0_44 = arith.constant 0 : index
    %86 = vector.load %arg10[%c64, %c0_44] : memref<96x32xf32, #tpu.memory_space<vmem>>, vector<32x32xf32>
    %cst_45 = arith.constant dense<0.000000e+00> : vector<8x32xf32>
    %87 = tpu.matmul %60, %86, %cst_45 {dimension_numbers = #tpu.dot_dimension_numbers<[1], [0], [0], [1], [0, 0, 1, 1], [], []>} : vector<8x32xf32>, vector<32x32xf32>, vector<8x32xf32> -> vector<8x32xf32>
    %88 = arith.addf %85, %87 : vector<8x32xf32>
    %89 = math.tanh %88 : vector<8x32xf32>
    %c32_46 = arith.constant 32 : index
    %c0_47 = arith.constant 0 : index
    %90 = vector.load %arg11[%c32_46, %c0_47] : memref<64x64xf32, #tpu.memory_space<vmem>>, vector<32x64xf32>
    %cst_48 = arith.constant dense<0.000000e+00> : vector<8x64xf32>
    %91 = tpu.matmul %89, %90, %cst_48 {dimension_numbers = #tpu.dot_dimension_numbers<[1], [0], [0], [1], [0, 0, 1, 1], [], []>} : vector<8x32xf32>, vector<32x64xf32>, vector<8x64xf32> -> vector<8x64xf32>
    %c0_49 = arith.constant 0 : index
    %c0_50 = arith.constant 0 : index
    %c0_51 = arith.constant 0 : index
    %c0_52 = arith.constant 0 : index
    %92 = vector.load %arg4[%c0_49, %c0_50, %c0_51, %c0_52] : memref<1x8x8x64xf32, #tpu.memory_space<vmem>>, vector<1x8x8x64xf32>
    %93 = vector.shape_cast %92 : vector<1x8x8x64xf32> to vector<8x8x64xf32>
    %94 = vector.shape_cast %91 : vector<8x64xf32> to vector<8x1x64xf32>
    %95 = vector.broadcast %94 : vector<8x1x64xf32> to vector<8x8x64xf32>
    %96 = arith.mulf %93, %95 : vector<8x8x64xf32>
    %cst_53 = arith.constant dense<0.000000e+00> : vector<8x8xf32>
    %97 = vector.multi_reduction <add>, %96, %cst_53 [2] : vector<8x8x64xf32> to vector<8x8xf32>
    %c0_54 = arith.constant 0 : index
    %c0_55 = arith.constant 0 : index
    %98 = vector.load %arg13[%c0_54, %c0_55] : memref<8x32xf32, #tpu.memory_space<vmem>>, vector<8x32xf32>
    tpu.vector_store %arg13[%c0_54, %c0_55], %60 {strides = array<i32>} : memref<8x32xf32, #tpu.memory_space<vmem>>, vector<8x32xf32>,
    %c0_56 = arith.constant 0 : index
    %c0_57 = arith.constant 0 : index
    %99 = vector.load %arg14[%c0_56, %c0_57] : memref<8x32xf32, #tpu.memory_space<vmem>>, vector<8x32xf32>
    tpu.vector_store %arg14[%c0_56, %c0_57], %58 {strides = array<i32>} : memref<8x32xf32, #tpu.memory_space<vmem>>, vector<8x32xf32>,
    %cst_58 = arith.constant 0.000000e+00 : f32
    %100 = vector.broadcast %cst_58 : f32 to vector<8x24xf32>
    %101 = tpu.concatenate %60, %58, %89, %97, %100 in 1 : vector<8x32xf32>, vector<8x32xf32>, vector<8x32xf32>, vector<8x8xf32>, vector<8x24xf32> -> vector<8x128xf32>
    %c0_59 = arith.constant 0 : index
    %c0_60 = arith.constant 0 : index
    %c0_61 = arith.constant 0 : index
    %102 = vector.load %arg12[%c0_59, %c0_60, %c0_61] : memref<1x8x128xf32, #tpu.memory_space<vmem>>, vector<1x8x128xf32>
    %103 = vector.shape_cast %102 : vector<1x8x128xf32> to vector<8x128xf32>
    %104 = vector.shape_cast %101 : vector<8x128xf32> to vector<1x8x128xf32>
    tpu.vector_store %arg12[%c0_59, %c0_60, %c0_61], %104 {strides = array<i32>} : memref<1x8x128xf32, #tpu.memory_space<vmem>>, vector<1x8x128xf32>,
    return
  }
  func.func @transform_0(%arg0: i32, %arg1: i32) -> (i32, i32, i32) {
    %c0_i32 = arith.constant 0 : i32
    %c0_i32_0 = arith.constant 0 : i32
    return %arg1, %arg0, %c0_i32 : i32, i32, i32
  }
  func.func @transform_1(%arg0: i32, %arg1: i32) -> (i32, i32, i32, i32) {
    %c0_i32 = arith.constant 0 : i32
    %c0_i32_0 = arith.constant 0 : i32
    %c0_i32_1 = arith.constant 0 : i32
    return %arg1, %arg0, %c0_i32, %c0_i32_0 : i32, i32, i32, i32
  }
  func.func @transform_2(%arg0: i32, %arg1: i32) -> (i32, i32, i32, i32) {
    %c0_i32 = arith.constant 0 : i32
    %c0_i32_0 = arith.constant 0 : i32
    %c0_i32_1 = arith.constant 0 : i32
    return %arg1, %arg0, %c0_i32, %c0_i32_0 : i32, i32, i32, i32
  }
  func.func @transform_3(%arg0: i32, %arg1: i32) -> (i32, i32, i32) {
    %c0_i32 = arith.constant 0 : i32
    %c0_i32_0 = arith.constant 0 : i32
    %c0_i32_1 = arith.constant 0 : i32
    return %c0_i32, %arg0, %c0_i32_0 : i32, i32, i32
  }
  func.func @transform_4(%arg0: i32, %arg1: i32) -> (i32, i32, i32) {
    %c0_i32 = arith.constant 0 : i32
    %c0_i32_0 = arith.constant 0 : i32
    %c0_i32_1 = arith.constant 0 : i32
    return %arg0, %c0_i32, %c0_i32_0 : i32, i32, i32
  }
  func.func @transform_5(%arg0: i32, %arg1: i32) -> (i32, i32) {
    %c0_i32 = arith.constant 0 : i32
    %c0_i32_0 = arith.constant 0 : i32
    return %arg0, %c0_i32 : i32, i32
  }
  func.func @transform_6(%arg0: i32, %arg1: i32) -> (i32, i32) {
    %c0_i32 = arith.constant 0 : i32
    %c0_i32_0 = arith.constant 0 : i32
    %c0_i32_1 = arith.constant 0 : i32
    return %c0_i32, %c0_i32_0 : i32, i32
  }
  func.func @transform_7(%arg0: i32, %arg1: i32) -> (i32, i32) {
    %c0_i32 = arith.constant 0 : i32
    %c0_i32_0 = arith.constant 0 : i32
    %c0_i32_1 = arith.constant 0 : i32
    return %c0_i32, %c0_i32_0 : i32, i32
  }
  func.func @transform_8(%arg0: i32, %arg1: i32) -> (i32, i32) {
    %c0_i32 = arith.constant 0 : i32
    %c0_i32_0 = arith.constant 0 : i32
    %c0_i32_1 = arith.constant 0 : i32
    return %c0_i32, %c0_i32_0 : i32, i32
  }
  func.func @transform_9(%arg0: i32, %arg1: i32) -> (i32, i32) {
    %c0_i32 = arith.constant 0 : i32
    %c0_i32_0 = arith.constant 0 : i32
    %c0_i32_1 = arith.constant 0 : i32
    return %c0_i32, %c0_i32_0 : i32, i32
  }
  func.func @transform_10(%arg0: i32, %arg1: i32) -> (i32, i32, i32) {
    %c0_i32 = arith.constant 0 : i32
    %c0_i32_0 = arith.constant 0 : i32
    return %arg1, %arg0, %c0_i32 : i32, i32, i32
  }
}

</mosaic_0001>

<bundles_post_ra>
// kernel: tpu_custom_call.1
= control target key start
LH: loop header
LB: loop body
LE: loop exit
PB: predicated region body
PF: predicated region fallthrough
CT: control target
= control target key end

     0   :  { %s4861_s0 = inlined_call_operand.vmem [shape: f32[6,8,4], index: 0, kind: input, shape index: {}]   ;;  %s4862_s1 = inlined_call_operand.hbm [shape: f32[6,8,16,64], index: 1, kind: input, shape index: {}]   ;;  %s4863_s2 = inlined_call_operand.hbm [shape: f32[6,8,8,64], index: 2, kind: input, shape index: {}]   ;;  %s4864_s3 = inlined_call_operand.hbm [shape: f32[2,8,32], index: 3, kind: input, shape index: {}]   ;;  %s4865_s4 = inlined_call_operand.vmem [shape: f32[8,8,32], index: 4, kind: input, shape index: {}]   ;;  %s4866_s5 = inlined_call_operand.vmem [shape: f32[8,8], index: 5, kind: input, shape index: {}]   ;;  %s4867_s6 = inlined_call_operand.hbm [shape: f32[8,16], index: 6, kind: input, shape index: {}]   ;;  %s4868_s7 = inlined_call_operand.vmem [shape: f32[120,128], index: 7, kind: input, shape index: {}]   ;;  %s4869_s8 = inlined_call_operand.vmem [shape: f32[96,32], index: 8, kind: input, shape index: {}]   ;;  %s4870_s9 = inlined_call_operand.hbm [shape: f32[64,64], index: 9, kind: input, shape index: {}]   ;;  %s4871_s10 = inlined_call_operand.hbm [shape: f32[6,8,128], index: 10, kind: output, shape index: {}]  }
   0x1   :  { %4895 = sst [smem:[#allocation27_spill]] %s4862_s1 }
   0x2   :  { %4896 = sst [smem:[#allocation28_spill]] %s4864_s3 }
   0x3   :  { %4897 = sst [smem:[#allocation29_spill]] %s4865_s4 }
   0x4   :  { %4898 = sst [smem:[#allocation30_spill]] %s4866_s5 }
   0x5   :  { %4899 = sst [smem:[#allocation31_spill]] %s4867_s6 }
   0x6   :  { %4900 = sst [smem:[#allocation32_spill]] %s4869_s8 }
   0x7   :  { %4901 = sst [smem:[#allocation33_spill]] %s4870_s9 }
   0x8   :  { %4902 = sst [smem:[#allocation34_spill]] %s4871_s10 }
   0x9   :  { %15 = vsyncpa [#allocation5], 0 }
   0xa   :  { %17 = vsyncpa [#allocation5 + $0x1], 0 }
   0xb   :  { %18 = vsyncpa [#allocation8], 0 }
   0xc   :  { %20 = vsyncpa [#allocation8 + $0x1], 0 }
   0xd   :  { %21 = vsyncpa [#allocation11], 0 }
   0xe   :  { %22 = vsyncpa [#allocation6], 0 }
   0xf   :  { %24 = vsyncpa [#allocation6 + $0x1], 0  ;;  %s3769_s13 = smov 0   ;;  %s3771_s14 = smov 0  }
  0x10   :  { %s3773_s15 = smov 0   ;;  %s3775_s16 = smov 0  }
  0x11   :  { %s3777_s17 = smov 0   ;;  %s3779_s18 = smov 0  }
  0x12 LB: > { %4903 = sst [smem:[#allocation19_spill]] %s3676_s13  ;;  %s3800_s19 = sadd.s32 4294967295, %s3696_s18   ;;  %s3696_s18 = sphi %s3779_s18, %s30_s18   ;;  %s3692_s17 = sphi %s3777_s17, %s4952_s17   ;;  %s3688_s16 = sphi %s3775_s16, %s4951_s16   ;;  %s3684_s15 = sphi %s3773_s15, %s4950_s15   ;;  %s3680_s14 = sphi %s3771_s14, %s4949_s14   ;;  %s3676_s13 = sphi %s3769_s13, %s4948_s13  }
  0x13   : > { %s3048_s20 = sadd.s32 4294967294, %s3696_s18   ;;  %p92_p0 = scmp.ne.s32.totalorder %s3680_s14, %s3676_s13 }
  0x14   : > { %p4874_p1 = scmp.eq.s32.totalorder %s3800_s19, 0  ;;  %p314_p3 = scmp.eq.s32.totalorder %s3048_s20, 5 }
  0x15   : > { %p3049_p5 = scmp.ge.s32.totalorder %s3696_s18, 1  ;;  %p321_p7 = scmp.lt.s32.totalorder %s3696_s18, 7 }
  0x16   : > { %p3809_p4 = por %p4874_p1, %p92_p0  ;;  %p3814_p6 = por %p314_p3, %p92_p0 }
  0x17   : > { %p3819_p8 = pnand %p3049_p5, %p321_p7  ;;  %s3698_s24 = smov [#allocation9]  }
  0x18   : > { %s4904_s21 = scalar_select %p3809_p4, 1, 0 }
  0x19   : > { %s4905_s22 = scalar_select %p3814_p6, 1, 0 }
  0x1a   : > { %s4907_s23 = scalar_select %p3819_p8, 1, 0 }
  0x1b   : > { %4906 = sst [smem:[#allocation20_spill]] %s4905_s22  ;;  %s335_s25 = sshll.u32 %s3698_s24, 4  ;;  %s3823_s25 = int_to_ptr.vmem [resolvable:$true] %s335_s25 }
  0x1c   : > { %p3302_p9 = pneg %p3819_p8  ;;  %s3699_s27 = smov [#allocation10]  }
  0x1d   : > { %s365_s28 = sshll.u32 %s3699_s27, 4  ;;  %s3700_s29 = smov [#allocation12]   ;;  %s3833_s28 = int_to_ptr.vmem [resolvable:$true] %s365_s28 }
  0x1e   : > { %p3829_p10 = pnand %p3302_p9, %p4874_p1  ;;  %s3835_s30 = sshll.u32 %s3700_s29, 4  ;;  %s382_s30 = int_to_ptr.vmem [resolvable:$true] %s3835_s30 }
  0x1f   : > { %s4909_s3 = sld [smem:[#allocation28_spill]] }
  0x20   : > { %p3845_p12 = pneg %p3829_p10 }
  0x25   : > { %s3458_s20 = scalar_lea.hbm %s4909_s3, 256 }
  0x26   : > { %p3459_p11 = scmp.ne.s32.totalorder %s4909_s3, %s3458_s20  ;;  %p3465_p3 = scmp.lt.u32.totalorder %s3458_s20, %s4909_s3 }
  0x28   : > { %p3461_p13 = pnand %p3845_p12, %p3459_p11 }
  0x2a   : > { %p3462_p0 = pneg %p3461_p13 }
  0x2c   : > { %p3467_p5 = pnand %p3465_p3, %p3462_p0 }
  0x2e   : > { %3470 = shalt.err (!%p3467_p5)
}
  0x2f   : > { %s3471_s22 = scalar_lea.vmem %s3823_s25, 256  ;;  %p3479_p2 = scmp.lt.s32.totalorder %s3823_s25, %s3823_s25 }
  0x30   : > { %p3472_p7 = scmp.ne.s32.totalorder %s3823_s25, %s3471_s22  ;;  %p3480_p6 = scmp.lt.s32.totalorder %s3471_s22, %s3471_s22 }
  0x32   : > { %p3474_p9 = pnand %p3472_p7, %p3845_p12  ;;  %p3481_p11 = por %p3480_p6, %p3479_p2 }
  0x34   : > { %p3475_p1 = pneg %p3474_p9 }
  0x36   : > { %p3482_p13 = pnand %p3481_p11, %p3475_p1 }
  0x38   : > { %3485 = shalt.err (!%p3482_p13)
}
  0x39   : > { %s4880_s11 = smov 128   ;;  %s4882_s12 = smov 8  }
  0x3a   : > { %3305 = dma.hbm_to_vmem [thread:$0]  (!%p3829_p10), %s4909_s3, 256, %s3823_s25, [#allocation8], %s4880_s11, %s4880_s11, %s4882_s12  }
  0x3b   : > { %s4911_s6 = sld [smem:[#allocation31_spill]] }
  0x41   : > { %s3486_s22 = scalar_lea.hbm %s4911_s6, 128 }
  0x42   : > { %p3487_p1 = scmp.ne.s32.totalorder %s4911_s6, %s3486_s22  ;;  %p3493_p0 = scmp.lt.u32.totalorder %s3486_s22, %s4911_s6 }
  0x44   : > { %p3489_p2 = pnand %p3487_p1, %p3845_p12 }
  0x46   : > { %p3490_p6 = pneg %p3489_p2 }
  0x48   : > { %p3495_p3 = pnand %p3493_p0, %p3490_p6 }
  0x4a   : > { %3498 = shalt.err (!%p3495_p3)
}
  0x4b   : > { %s3499_s25 = scalar_lea.vmem %s3833_s28, 128  ;;  %p3507_p11 = scmp.lt.s32.totalorder %s3833_s28, %s3833_s28 }
  0x4c   : > { %p3500_p5 = scmp.ne.s32.totalorder %s3833_s28, %s3499_s25  ;;  %p3508_p13 = scmp.lt.s32.totalorder %s3499_s25, %s3499_s25 }
  0x4e   : > { %p3502_p7 = pnand %p3500_p5, %p3845_p12  ;;  %p3509_p1 = por %p3508_p13, %p3507_p11 }
  0x50   : > { %p3503_p9 = pneg %p3502_p7 }
  0x52   : > { %p3510_p2 = pnand %p3509_p1, %p3503_p9 }
  0x54   : > { %3513 = shalt.err (!%p3510_p2)
}
  0x55   : > { %3308 = dma.hbm_to_vmem [thread:$0]  (!%p3829_p10), %s4911_s6, 128, %s3833_s28, [#allocation11]  }
  0x56   : > { %s4912_s9 = sld [smem:[#allocation33_spill]] }
  0x5c   : > { %s3514_s20 = scalar_lea.hbm %s4912_s9, 1024 }
  0x5d   : > { %p3515_p6 = scmp.ne.s32.totalorder %s4912_s9, %s3514_s20  ;;  %p3521_p5 = scmp.lt.u32.totalorder %s3514_s20, %s4912_s9 }
  0x5f   : > { %p3517_p0 = pnand %p3515_p6, %p3845_p12 }
  0x61   : > { %p3518_p3 = pneg %p3517_p0 }
  0x63   : > { %p3523_p7 = pnand %p3521_p5, %p3518_p3 }
  0x65   : > { %3526 = shalt.err (!%p3523_p7)
}
  0x66   : > { %s3527_s25 = scalar_lea.vmem %s382_s30, 1024  ;;  %p3535_p1 = scmp.lt.s32.totalorder %s382_s30, %s382_s30 }
  0x67   : > { %p3528_p9 = scmp.ne.s32.totalorder %s382_s30, %s3527_s25  ;;  %p3536_p2 = scmp.lt.s32.totalorder %s3527_s25, %s3527_s25 }
  0x69   : > { %p3530_p11 = pnand %p3528_p9, %p3845_p12  ;;  %p3537_p4 = por %p3536_p2, %p3535_p1 }
  0x6b   : > { %p3531_p13 = pneg %p3530_p11 }
  0x6d   : > { %p3538_p8 = pnand %p3537_p4, %p3531_p13 }
  0x6f   : > { %3541 = shalt.err (!%p3538_p8)
}
  0x70   : > { %3311 = dma.hbm_to_vmem [thread:$0]  (!%p3829_p10), %s4912_s9, 1024, %s382_s30, [#allocation11], %s4880_s11, %s4880_s11, %s4882_s12  }
  0x71   : > { %s79_s13 = sadd.s32 1, %s3684_s15  ;;  %s39_s26 = sadd.s32 1, %s3692_s17 }
  0x72   : > { %p86_p4 = scmp.ne.s32.totalorder %s3684_s15, %s3680_s14  ;;  %p40_p8 = scmp.ge.s32.totalorder %s39_s26, 6 }
  0x73   : > { %p87_p12 = scmp.eq.s32.totalorder %s3696_s18, 0  ;;  %p4913_p6 = scmp.eq.s32.totalorder %s3800_s19, 5 }
  0x74   : > { %p3326_p3 = scmp.lt.s32.totalorder %s3696_s18, 6  ;;  %s4954_s26 = smov (%p40_p8, %s39_s26), 0 }
  0x75   : > { %p3921_p0 = por %p4913_p6, %p86_p4  ;;  %p88_p5 = por %p87_p12, %p86_p4 }
  0x76   : > { %s3929_s8 = sand.u32 1, %s3684_s15   ;;  %s74_s30 = ssub.s32 %s3692_s17, %s4954_s26 }
  0x77   : > { %p77_p10 = scmp.eq.s32.totalorder %s74_s30, 0  ;;  %s3056_s10 = sshll.u32 %s3929_s8, 7 }
  0x78   : > { %s3088_s20 = sshll.u32 %s3692_s17, 11  ;;  %s4915_s1 = sld [smem:[#allocation27_spill]] }
  0x79   : > { %s3936_s24 = scalar_select %p77_p10, %s3684_s15, %s79_s13  }
  0x7a   : > { %s409_s25 = scalar_lea.vmem [#allocation4], %s3056_s10  ;;  %p3947_p7 = pnand %p3326_p3, %p88_p5 }
  0x7b   : > { %s419_s28 = sshll.u32 %s409_s25, 4  ;;  %s3059_s30 = sshll.u32 %s3929_s8, 6  ;;  %s3943_s28 = int_to_ptr.vmem [resolvable:$true] %s419_s28 }
  0x7c   : > { %s406_s27 = scalar_lea.sflag [#allocation5], %s3929_s8  ;;  %p3544_p11 = pneg %p3947_p7 }
  0x7e   : > { %s3941_s22 = scalar_lea.hbm %s4915_s1, %s3088_s20  ;;  %s3547_s25 = scalar_lea.hbm %s4915_s1, 12288 }
  0x7f   : > { %s3542_s20 = scalar_lea.hbm %s3941_s22, 2048  ;;  %p3548_p2 = scmp.lt.u32.totalorder %s3941_s22, %s4915_s1 }
  0x80   : > { %p3543_p9 = scmp.ne.s32.totalorder %s3941_s22, %s3542_s20  ;;  %p3549_p4 = scmp.lt.u32.totalorder %s3547_s25, %s3542_s20 }
  0x81   : > { %p3551_p12 = scmp.lt.u32.totalorder %s3542_s20, %s3941_s22 }
  0x82   : > { %p3545_p13 = pnand %p3544_p11, %p3543_p9  ;;  %p3550_p8 = por %p3549_p4, %p3548_p2 }
  0x84   : > { %p3546_p1 = pneg %p3545_p13  ;;  %p3552_p6 = por %p3551_p12, %p3550_p8 }
  0x86   : > { %p3553_p3 = pnand %p3552_p6, %p3546_p1 }
  0x88   : > { %3556 = shalt.err (!%p3553_p3)
}
  0x89   : > { %s3557_s13 = scalar_lea.vmem %s3943_s28, 2048  ;;  %s3703_s10 = smov [#allocation4]  }
  0x8a   : > { %p3558_p5 = scmp.ne.s32.totalorder %s3943_s28, %s3557_s13  ;;  %s3562_s29 = sshll.u32 %s3703_s10, 4  ;;  %s3563_s29 = int_to_ptr.vmem [resolvable:$false] %s3562_s29 }
  0x8b   : > { %s3564_s11 = scalar_lea.vmem %s3563_s29, 4096  ;;  %p3565_p13 = scmp.lt.s32.totalorder %s3943_s28, %s3563_s29 }
  0x8c   : > { %p3560_p10 = pnand %p3558_p5, %p3544_p11  ;;  %p3566_p2 = scmp.lt.s32.totalorder %s3564_s11, %s3557_s13 }
  0x8e   : > { %p3561_p9 = pneg %p3560_p10  ;;  %p3567_p4 = por %p3566_p2, %p3565_p13 }
  0x90   : > { %p3568_p8 = pnand %p3567_p4, %p3561_p9 }
  0x92   : > { %3571 = shalt.err (!%p3568_p8)
}
  0x93   : > { %s4917_s12 = smov 8   ;;  %s4918_s20 = smov 128  }
  0x94   : > { %3315 = dma.hbm_to_vmem [thread:$0]  (!%p3947_p7), %s3941_s22, 2048, %s3943_s28, %s406_s27, %s4918_s20, %s4918_s20, %s4917_s12  }
  0x95   : > { %s3089_s25 = sshll.u32 %s3692_s17, 10  ;;  %s433_s11 = scalar_lea.vmem [#allocation7], %s3059_s30 }
  0x96   : > { %s3988_s29 = scalar_lea.hbm %s4863_s2, %s3089_s25  ;;  %s442_s1 = sshll.u32 %s433_s11, 4  ;;  %s3992_s1 = int_to_ptr.vmem [resolvable:$true] %s442_s1 }
  0x97   : > { %s4919_s3 = sand.u32 1, %s3696_s18   ;;  %s3572_s9 = scalar_lea.hbm %s3988_s29, 1024 }
  0x98   : > { %s3996_s6 = scalar_lea.sflag [#allocation8], %s4919_s3  ;;  %p3573_p1 = scmp.ne.s32.totalorder %s3988_s29, %s3572_s9 }
  0x99   : > { %s3577_s8 = scalar_lea.hbm %s4863_s2, 6144  ;;  %p3578_p3 = scmp.lt.u32.totalorder %s3988_s29, %s4863_s2 }
  0x9a   : > { %p3575_p12 = pnand %p3573_p1, %p3544_p11  ;;  %p3579_p5 = scmp.lt.u32.totalorder %s3577_s8, %s3572_s9 }
  0x9b   : > { %p3581_p9 = scmp.lt.u32.totalorder %s3572_s9, %s3988_s29 }
  0x9c   : > { %p3576_p6 = pneg %p3575_p12  ;;  %p3580_p10 = por %p3579_p5, %p3578_p3 }
  0x9e   : > { %p3582_p13 = por %p3581_p9, %p3580_p10 }
  0xa0   : > { %p3583_p2 = pnand %p3582_p13, %p3576_p6 }
  0xa2   : > { %3586 = shalt.err (!%p3583_p2)
}
  0xa3   : > { %s3587_s3 = scalar_lea.vmem %s3992_s1, 1024  ;;  %s3704_s30 = smov [#allocation7]  }
  0xa4   : > { %p3588_p4 = scmp.ne.s32.totalorder %s3992_s1, %s3587_s3  ;;  %s3592_s10 = sshll.u32 %s3704_s30, 4  ;;  %s3593_s10 = int_to_ptr.vmem [resolvable:$false] %s3592_s10 }
  0xa5   : > { %s3594_s13 = scalar_lea.vmem %s3593_s10, 2048  ;;  %p3595_p12 = scmp.lt.s32.totalorder %s3992_s1, %s3593_s10 }
  0xa6   : > { %p3590_p8 = pnand %p3588_p4, %p3544_p11  ;;  %p3596_p3 = scmp.lt.s32.totalorder %s3594_s13, %s3587_s3 }
  0xa8   : > { %p3591_p1 = pneg %p3590_p8  ;;  %p3597_p5 = por %p3596_p3, %p3595_p12 }
  0xaa   : > { %p3598_p10 = pnand %p3597_p5, %p3591_p1 }
  0xac   : > { %3601 = shalt.err (!%p3598_p10)
}
  0xad   : > { %3318 = dma.hbm_to_vmem [thread:$0]  (!%p3947_p7), %s3988_s29, 1024, %s3992_s1, %s3996_s6, %s4918_s20, %s4918_s20, %s4917_s12  }
  0xae   : > { %p4920_p11 = scmp.ne.s32.totalorder %s4907_s23, 0 }
  0xb0   : > { %454 = sbr.rel (%p4920_p11) target bundleno = 3792 (0xed0), region = 60 }
  0xb7   : > { %s4028_s9 = sand.u32 1, %s3680_s14   ;;  %p4921_p6 = scmp.ne.s32.totalorder %s4904_s21, 0 }
  0xb8   : > { %s3063_s11 = sshll.u32 %s4028_s9, 7  ;;  %s457_s22 = scalar_lea.sflag [#allocation5], %s4028_s9 }
  0xb9   : > { %s4032_s28 = scalar_lea.vmem [#allocation4], %s3063_s11 }
  0xba   : > { %3655 = dma.done.wait (%p4921_p6), %s457_s22, 2048  }
  0xbb   : > { %3657 = vsyncadd (%p4921_p6), %s457_s22, 4294965248  ;;  %s465_s1 = sand.u32 1, %s3800_s19   ;;  %s3064_s6 = sshll.u32 %s4028_s9, 6 }
  0xbc   : > { %s466_s23 = scalar_lea.sflag [#allocation8], %s465_s1  ;;  %s4040_s4 = scalar_lea.vmem [#allocation7], %s3064_s6 }
  0xbd   : > { %3659 = dma.done.wait (%p4921_p6), %s466_s23, 1024  }
  0xbe   : > { %3661 = vsyncadd (%p4921_p6), %s466_s23, 4294966272  ;;  %p4922_p7 = scmp.eq.s32.totalorder %s3800_s19, 0 }
  0xc0   : > { %3663 = dma.done.wait (%p4922_p7), [#allocation8], 256   ;;  %p4923_p9 = pmov %p4922_p7 }
  0xc1   : > { %p4924_p13 = pmov %p4922_p7 }
  0xc2   : > { %3665 = vsyncadd (%p4923_p9), [#allocation8], 4294967040 }
  0xc3   : > { %3667 = dma.done.wait (%p4924_p13), [#allocation11], 1152   ;;  %p4925_p2 = pmov %p4922_p7 }
  0xc4   : > { %s3068_s12 = sshll.u32 %s4028_s9, 3  ;;  %p539_p4 = scmp.lt.s32.totalorder %s3688_s16, 5 }
  0xc5   : > { %3669 = vsyncadd (%p4925_p2), [#allocation11], 4294966144  ;;  %s4062_s25 = scalar_lea.vmem [#allocation13], %s3068_s12  ;;  %p3070_p8 = scmp.ne.s32.totalorder %s3688_s16, 0 }
  0xc6   : > { %s540_s20 = scalar_select %p539_p4, %s3688_s16, 5 }
  0xc7   : > { %561 = sbr.rel (%p3070_p8) target bundleno = 206 (0xce), region = 84  ;;  %v562_v0 = vld [vmem:[#allocation9] sm:$0xff] (!%p3070_p8)  ;;  %vm563_vm0 = vcmask (!%p3070_p8), 261120   ;;  %v566_v1 = vld [vmem:[#allocation9 + $0x8] sm:$0xff] (!%p3070_p8) }
  0xc8   : > { %s3069_s21 = sshll.u32 %s540_s20, 3  ;;  %564 = vst.msk [vmem:[#allocation2] sm:$0xff] (!%p3070_p8), %vm563_vm0, %v562_v0  ;;  %567 = vst.msk [vmem:[#allocation3] sm:$0xff] (!%p3070_p8), %vm563_vm0, %v566_v1 }
  0xc9   : > { %s4060_s27 = scalar_lea.vmem %s4861_s0, %s3069_s21 }
  0xce PF: > { %v672_v2 = vld [vmem:[#allocation12] sm:$0xff]  ;;  %v673_v3 = vld [vmem:[#allocation12 + $0x8] sm:$0xff]  ;;  %v674_v4 = vld [vmem:[#allocation12 + $0x10] sm:$0xff]  ;;  %v4886_v5 = vmov 0.0|0.0   ;;  %vm3706_vm1 = vmmov 0   ;;  %v4884_v8 = vmov 0.0   ;;  %v755_v13 = vlaneseq }
  0xcf   : > { %3231 = vmatprep.subr.bf16.mxu1 %v4886_v5  ;;  %v3232_v6 = vpack.c.bf16 %v673_v3, %v672_v2  ;;  %v675_v7 = vld [vmem:[#allocation12 + $0x18] sm:$0xff]  ;;  %3147 = vmatprep.mubr.msk.f32.mxu1 %vm3706_vm1, %v4884_v8  ;;  %vm676_vm2 = vcmask 261120   ;;  %v3708_v11 = vmov 1966171168   ;;  %v4091_v24 = vld [vmem:[%s4032_s28] sm:$0xff]  ;;  %vm856_vm3 = vcmask 523264  }
  0xd0   : > { %3134 = vmatprep.subr.mxu0 %v4884_v8  ;;  %3136 = vmatprep.mubr.msk.f32.mxu0 %vm3706_vm1, %v4884_v8  ;;  %v3235_v9 = vpack.c.bf16 %v675_v7, %v674_v4  ;;  %v4072_v10 = vld [vmem:[#allocation2] sm:$0xff]  ;;  %v753_v12 = vunpack.c.l.s4 %v3708_v11  ;;  %v4080_v15 = vshrl.u32 %v755_v13, 7  ;;  %v4097_v29 = vld [vmem:[%s4032_s28 + $0x8] sm:$0xff]  ;;  %v4108_v36 = vld [vmem:[%s4032_s28 + $0x18] sm:$0xff]  ;;  %vm932_vm4 = vcmask 130112   ;;  %s3710_s10 = smov 32  }
  0xd1   : > { %3233 = vmatpush3.bf16.msra.mxu1 %v3232_v6  ;;  %v4101_v31 = vld [vmem:[%s4032_s28 + $0x10] sm:$0xff]  ;;  %v4113_v39 = vld [vmem:[%s4032_s28 + $0x20] sm:$0xff]  ;;  %v4120_v45 = vld [vmem:[%s4032_s28 + $0x28] sm:$0xff]  ;;  %vm997_vm5 = vcmask 1041409   ;;  %vm999_vm6 = vcmask 1042434   ;;  %vm1001_vm7 = vcmask 1043459  }
  0xd2   : > { %3234 = vmatprep.subr.bf16.mxu1 %v4886_v5  ;;  %v754_v14 = vunpack.c.0.s8 %v753_v12  ;;  %4926 = vst [vmem:[#allocation21_spill] sm:$0xff] %v4080_v15  ;;  %v4087_v20 = vsub.s32 0, %v4080_v15  ;;  %v4124_v48 = vld [vmem:[%s4032_s28 + $0x40] sm:$0xff]  ;;  %v4131_v53 = vld [vmem:[%s4032_s28 + $0x48] sm:$0xff]  ;;  %v4136_v56 = vld [vmem:[%s4032_s28 + $0x30] sm:$0xff]  ;;  %vm1003_vm8 = vcmask 1044484  }
  0xd3   : > { %v4143_v61 = vld [vmem:[%s4032_s28 + $0x38] sm:$0xff]  ;;  %v4147_v0 = vld [vmem:[%s4032_s28 + $0x50] sm:$0xff]  ;;  %v4158_v11 = vld [vmem:[%s4032_s28 + $0x60] sm:$0xff]  ;;  %vm1005_vm9 = vcmask 1045509   ;;  %vm1007_vm10 = vcmask 1046534   ;;  %vm1009_vm11 = vcmask 1047559  }
  0xd4   : > { %v4083_v16 = vsub.s32 %v754_v14, %v4080_v15  ;;  %v4154_v6 = vld [vmem:[%s4032_s28 + $0x58] sm:$0xff]  ;;  %vm1012_vm12 = vcmask 130048   ;;  %vm581_vm13 = vcmask 1043456   ;;  %vm577_vm14 = vcmask 31744   ;;  %s3711_s29 = smov 64   ;;  %s4937_s19 = sld [smem:[#allocation32_spill]] }
  0xd5   : > { %3236 = vmatpush3.bf16.msra.mxu1 %v3235_v9  ;;  %s4938_s13 = sld [smem:[#allocation30_spill]]  ;;  %s4940_s22 = sld [smem:[#allocation29_spill]]  ;;  %vm2112_vm15 = vcmask 64512   ;;  %vm2844_vm0 = vcmask 785408  }
  0xd6   : > { %3249 = vmatprep.subr.bf16.mxu1 %v4886_v5  ;;  %4927 = vst [vmem:[#allocation22_spill] sm:$0xff] %v4083_v16  ;;  %s3713_s1 = smov [#allocation13]  }
  0xd7   : > { %s3606_s6 = sshll.u32 %s3713_s1, 4  ;;  %s3607_s6 = int_to_ptr.vmem [resolvable:$false] %s3606_s6 }
  0xd8   : > { %3148 = vmatmul.mubr.msk.f32.vlgmr.msra.gmra.mrb[0].mxu1 %vm676_vm2, %v4072_v10  ;;  %s3608_s23 = scalar_lea.vmem %s3607_s6, 256 }
  0xd9   : > { %3173 = vmatprep.mubr.msk.f32.mxu1 %vm3706_vm1, %v4884_v8 }
 0x1ab   : > { %v746_v17 = vpop.f32.mrb[0].mxu1 }
 0x1ac   : > { %v751_v18 = vcombine.high %v746_v17, %v746_v17  ;;  %v758_v19 = vrot.slane %v746_v17, %v4083_v16  ;;  %v3149_v21 = vpop.f32.mrb[1].mxu1 }
 0x1ae   : > { %v766_v22 = vcombine.high %v758_v19, %v758_v19  ;;  %v774_v23 = vrot.slane %v758_v19, %v4083_v16  ;;  %v765_v25 = vrot.slane %v751_v18, %v4083_v16  ;;  %v4165_v19 = vld [vmem:[%s4032_s28 + $0x68] sm:$0xff] }
 0x1af   : > { %4928 = vst [vmem:[#allocation23_spill] sm:$0xff] %v4165_v19 }
 0x1b0   : > { %v796_v26 = vcombine.high %v774_v23, %v774_v23  ;;  %v803_v27 = vrot.slane %v774_v23, %v4087_v20  ;;  %v788_v28 = vrot.slane %v766_v22, %v4083_v16  ;;  %v781_v33 = vrot.slane %v765_v25, %v4083_v16  ;;  %v4169_v22 = vld [vmem:[%s4032_s28 + $0x70] sm:$0xff] }
 0x1b1   : > { %v767_v40 = vcombine.high %v765_v25, %v765_v25  ;;  %4929 = vst [vmem:[#allocation24_spill] sm:$0xff] %v4169_v22 }
 0x1b2   : > { %v840_v30 = vmul.f32 %v803_v27, %v4091_v24  ;;  %v807_v32 = vrot.slane %v788_v28, %v4087_v20  ;;  %v841_v35 = vmul.f32 %v803_v27, %v4097_v29  ;;  %v811_v37 = vrot.slane %v796_v26, %v4087_v20 }
 0x1b3   : > { %v819_v46 = vrot.slane %v781_v33, %v4087_v20  ;;  %v798_v47 = vcombine.high %v788_v28, %v788_v28  ;;  %v795_v55 = vrot.slane %v767_v40, %v4083_v16  ;;  %v797_v63 = vcombine.high %v781_v33, %v781_v33  ;;  %v4176_v28 = vld [vmem:[%s4032_s28 + $0x78] sm:$0xff] }
 0x1b4   : > { %v857_v34 = vsel %vm856_vm3, %v840_v30, 0.0  ;;  %v842_v38 = vmul.f32 %v807_v32, %v4101_v31  ;;  %v843_v42 = vmul.f32 %v807_v32, %v4108_v36  ;;  %v860_v43 = vsel %vm856_vm3, %v841_v35, 0.0  ;;  %4930 = vst [vmem:[#allocation25_spill] sm:$0xff] %v4176_v28 }
 0x1b5   : > { %858 = vadd.xlane.f32.xlu0 %v857_v34  ;;  %v844_v44 = vmul.f32 %v811_v37, %v4113_v39  ;;  %v845_v50 = vmul.f32 %v811_v37, %v4120_v45  ;;  %v848_v52 = vmul.f32 %v819_v46, %v4124_v48  ;;  %v815_v54 = vrot.slane %v798_v47, %v4087_v20 }
 0x1b6   : > { %v863_v41 = vsel %vm856_vm3, %v842_v38, 0.0  ;;  %v866_v49 = vsel %vm856_vm3, %v843_v42, 0.0  ;;  %v849_v58 = vmul.f32 %v819_v46, %v4131_v53  ;;  %v823_v62 = vrot.slane %v795_v55, %v4087_v20 }
 0x1b7   : > { %864 = vadd.xlane.f32.xlu1 %v863_v41  ;;  %v869_v51 = vsel %vm856_vm3, %v844_v44, 0.0  ;;  %v872_v57 = vsel %vm856_vm3, %v845_v50, 0.0  ;;  %v881_v59 = vsel %vm856_vm3, %v848_v52, 0.0  ;;  %v846_v60 = vmul.f32 %v815_v54, %v4136_v56 }
 0x1b8   : > { %v884_v1 = vsel %vm856_vm3, %v849_v58, 0.0  ;;  %v847_v2 = vmul.f32 %v815_v54, %v4143_v61  ;;  %v850_v4 = vmul.f32 %v823_v62, %v4147_v0  ;;  %v827_v7 = vrot.slane %v797_v63, %v4087_v20 }
 0x1b9   : > { %861 = vadd.xlane.f32.xlu0 %v860_v43  ;;  %v875_v3 = vsel %vm856_vm3, %v846_v60, 0.0  ;;  %v799_v9 = vcombine.high %v795_v55, %v795_v55  ;;  %v851_v14 = vmul.f32 %v823_v62, %v4154_v6  ;;  %v4195_v43 = vand.u32 127, %v755_v13 }
 0x1ba   : > { %v878_v12 = vsel %vm856_vm3, %v847_v2, 0.0  ;;  %v887_v17 = vsel %vm856_vm3, %v850_v4, 0.0  ;;  %v852_v18 = vmul.f32 %v827_v7, %v4158_v11  ;;  %v853_v25 = vmul.f32 %v827_v7, %v4165_v19 }
 0x1bb   : > { %867 = vadd.xlane.f32.xlu1 %v866_v49  ;;  %v831_v21 = vrot.slane %v799_v9, %v4087_v20  ;;  %v890_v23 = vsel %vm856_vm3, %v851_v14, 0.0  ;;  %4931 = vst [vmem:[#allocation26_spill] sm:$0xff] %v4195_v43  ;;  %v927_v46 = vadd.s32 4294967288, %v4195_v43  ;;  %v4211_v52 = vsub.s32 %v4195_v43, %v4080_v15 }
 0x1bc   : > { %v893_v26 = vsel %vm856_vm3, %v852_v18, 0.0  ;;  %v896_v30 = vsel %vm856_vm3, %v853_v25, 0.0 }
 0x1bd   : > { %870 = vadd.xlane.f32.xlu0 %v869_v51  ;;  %v854_v27 = vmul.f32 %v831_v21, %v4169_v22  ;;  %v855_v32 = vmul.f32 %v831_v21, %v4176_v28  ;;  %v4205_v50 = vsub.s32 %v927_v46, %v4080_v15 }
 0x1bf   : > { %873 = vadd.xlane.f32.xlu1 %v872_v57  ;;  %v899_v33 = vsel %vm856_vm3, %v854_v27, 0.0  ;;  %v902_v34 = vsel %vm856_vm3, %v855_v32, 0.0 }
 0x1c1   : > { %882 = vadd.xlane.f32.xlu0 %v881_v59 }
 0x1c3   : > { %885 = vadd.xlane.f32.xlu1 %v884_v1 }
 0x1c5   : > { %876 = vadd.xlane.f32.xlu0 %v875_v3 }
 0x1c7   : > { %879 = vadd.xlane.f32.xlu1 %v878_v12 }
 0x1c9   : > { %888 = vadd.xlane.f32.xlu0 %v887_v17 }
 0x1cb   : > { %891 = vadd.xlane.f32.xlu1 %v890_v23 }
 0x1cd   : > { %894 = vadd.xlane.f32.xlu0 %v893_v26 }
 0x1cf   : > { %897 = vadd.xlane.f32.xlu1 %v896_v30 }
 0x1d1   : > { %900 = vadd.xlane.f32.xlu0 %v899_v33 }
 0x1d3   : > { %903 = vadd.xlane.f32.xlu1 %v902_v34 }
 0x242   : > { %v4182_v35 = vpop.xlane.xlu0 %858 }
 0x243   : > { %v926_v63 = vrot.slane %v4182_v35, %v4211_v52 }
 0x244   : > { %v4184_v37 = vpop.xlane.xlu1 %864 }
 0x245   : > { %v937_v57 = vrot.slane %v4184_v37, %v4211_v52 }
 0x246   : > { %v4186_v38 = vpop.xlane.xlu0 %861 }
 0x247   : > { %v931_v58 = vrot.slane %v4186_v38, %v4205_v50 }
 0x248   : > { %v4188_v40 = vpop.xlane.xlu1 %867 }
 0x249   : > { %v941_v13 = vrot.slane %v4188_v40, %v4205_v50  ;;  %v933_v7 = vsel %vm932_vm4, %v931_v58, %v926_v63 }
 0x24a   : > { %v4190_v41 = vpop.xlane.xlu0 %870 }
 0x24b   : > { %v946_v60 = vrot.slane %v4190_v41, %v4211_v52  ;;  %v942_v1 = vsel %vm932_vm4, %v941_v13, %v937_v57 }
 0x24c   : > { %v4192_v42 = vpop.xlane.xlu1 %873  ;;  %v998_v14 = vsel %vm997_vm5, %v942_v1, %v933_v7  ;;  %v4274_v7 = vsub.s32 1, %v4080_v15 }
 0x24d   : > { %v950_v55 = vrot.slane %v4192_v42, %v4205_v50 }
 0x24e   : > { %v4197_v44 = vpop.xlane.xlu0 %882 }
 0x24f   : > { %v951_v4 = vsel %vm932_vm4, %v950_v55, %v946_v60  ;;  %v964_v26 = vrot.slane %v4197_v44, %v4211_v52 }
 0x250   : > { %v4200_v47 = vpop.xlane.xlu1 %885  ;;  %v1000_v21 = vsel %vm999_vm6, %v951_v4, %v998_v14  ;;  %v3709_v4 = vmov 0  }
 0x251   : > { %v968_v17 = vrot.slane %v4200_v47, %v4205_v50  ;;  %3393 = vset.pattern.permute.xlu0 %v3709_v4  ;;  %3392 = vset.pattern.permute.xlu1 %v3709_v4 }
 0x252   : > { %v4202_v49 = vpop.xlane.xlu0 %876 }
 0x253   : > { %v955_v2 = vrot.slane %v4202_v49, %v4211_v52  ;;  %v969_v34 = vsel %vm932_vm4, %v968_v17, %v964_v26  ;;  %v4279_v17 = vsub.s32 5, %v4080_v15 }
 0x254   : > { %v4207_v51 = vpop.xlane.xlu1 %879 }
 0x255   : > { %v959_v59 = vrot.slane %v4207_v51, %v4205_v50 }
 0x256   : > { %v4215_v54 = vpop.xlane.xlu0 %888 }
 0x257   : > { %v960_v9 = vsel %vm932_vm4, %v959_v59, %v955_v2  ;;  %v973_v23 = vrot.slane %v4215_v54, %v4211_v52 }
 0x258   : > { %v4227_v62 = vpop.xlane.xlu1 %891  ;;  %v1002_v27 = vsel %vm1001_vm7, %v960_v9, %v1000_v21 }
 0x259   : > { %v977_v12 = vrot.slane %v4227_v62, %v4205_v50  ;;  %v1004_v58 = vsel %vm1003_vm8, %v969_v34, %v1002_v27  ;;  %v4288_v27 = vsub.s32 6, %v4080_v15 }
 0x25a   : > { %v4234_v3 = vpop.xlane.xlu0 %894 }
 0x25b   : > { %v982_v30 = vrot.slane %v4234_v3, %v4211_v52  ;;  %v978_v33 = vsel %vm932_vm4, %v977_v12, %v973_v23 }
 0x25c   : > { %v4244_v18 = vpop.xlane.xlu1 %897  ;;  %v1006_v59 = vsel %vm1005_vm9, %v978_v33, %v1004_v58  ;;  %v4304_v58 = vsub.s32 3, %v4080_v15 }
 0x25d   : > { %v986_v25 = vrot.slane %v4244_v18, %v4205_v50 }
 0x25e   : > { %v4256_v32 = vpop.xlane.xlu0 %900 }
 0x25f   : > { %v987_v13 = vsel %vm932_vm4, %v986_v25, %v982_v30  ;;  %v991_v55 = vrot.slane %v4256_v32, %v4211_v52  ;;  %v4284_v25 = vsub.s32 2, %v4080_v15 }
 0x260   : > { %v4260_v46 = vpop.xlane.xlu1 %903  ;;  %v1008_v63 = vsel %vm1007_vm10, %v987_v13, %v1006_v59 }
 0x261   : > { %v995_v57 = vrot.slane %v4260_v46, %v4205_v50 }
 0x263   : > { %v996_v60 = vsel %vm932_vm4, %v995_v57, %v991_v55 }
 0x264   : > { %v1010_v1 = vsel %vm1009_vm11, %v996_v60, %v1008_v63 }
 0x265   : > { %v1013_v2 = vsel %vm1012_vm12, %v1010_v1, -inf }
 0x266   : > { %1014 = vmax.xlane.f32.xlu0 %v1013_v2 }
 0x2f3   : > { %v1015_v9 = vpop.xlane.xlu0 %1014 }
 0x2f4   : > { %v1020_v12 = vrot.slane %v1015_v9, %v4087_v20  ;;  %v1024_v14 = vrot.slane %v1015_v9, %v4274_v7  ;;  %v4291_v30 = vrot.slane %v1015_v9, %v4279_v17  ;;  %v1028_v13 = vrot.slane %v1015_v9, %v4284_v25 }
 0x2f5   : > { %v1032_v2 = vrot.slane %v1015_v9, %v4304_v58 }
 0x2f6   : > { %v1057_v21 = vsub.f32 %v4182_v35, %v1020_v12  ;;  %v1058_v23 = vsub.f32 %v4186_v38, %v1020_v12  ;;  %v1059_v26 = vsub.f32 %v4184_v37, %v1024_v14  ;;  %v1060_v55 = vsub.f32 %v4188_v40, %v1024_v14 }
 0x2f7   : > { %v4296_v38 = vsub.s32 7, %v4080_v15  ;;  %v4299_v37 = vrot.slane %v1015_v9, %v4288_v27  ;;  %v1067_v57 = vsub.f32 %v4215_v54, %v4291_v30  ;;  %v1061_v59 = vsub.f32 %v4190_v41, %v1028_v13 }
 0x2f8   : > { %v1073_v33 = vmul.f32 1.442695, %v1057_v21  ;;  %v1075_v34 = vmul.f32 1.442695, %v1058_v23  ;;  %v1077_v35 = vmul.f32 1.442695, %v1059_v26  ;;  %v1062_v4 = vsub.f32 %v4192_v42, %v1028_v13 }
 0x2f9   : > { %v1079_v60 = vmul.f32 1.442695, %v1060_v55  ;;  %v1048_v40 = vrot.slane %v1015_v9, %v4296_v38  ;;  %v1069_v63 = vsub.f32 %v4234_v3, %v4299_v37  ;;  %v1093_v1 = vmul.f32 1.442695, %v1067_v57 }
 0x2fa   : > { %3394 = vpow2.f32 %v1073_v33  ;;  %v1081_v12 = vmul.f32 1.442695, %v1061_v59  ;;  %v4319_v23 = vsub.s32 4, %v4080_v15  ;;  %v1063_v3 = vsub.f32 %v4202_v49, %v1032_v2 }
 0x2fb   : > { %3396 = vpow2.f32 %v1075_v34  ;;  %v1071_v14 = vsub.f32 %v4256_v32, %v1048_v40  ;;  %v1097_v41 = vmul.f32 1.442695, %v1069_v63  ;;  %v1083_v26 = vmul.f32 1.442695, %v1062_v4 }
 0x2fc   : > { %3398 = vpow2.f32 %v1077_v35  ;;  %v1036_v32 = vrot.slane %v1015_v9, %v4319_v23  ;;  %v1064_v34 = vsub.f32 %v4207_v51, %v1032_v2  ;;  %v1085_v13 = vmul.f32 1.442695, %v1063_v3 }
 0x2fd   : > { %3400 = vpow2.f32 %v1079_v60  ;;  %v1101_v33 = vmul.f32 1.442695, %v1071_v14 }
 0x2fe   : > { %3402 = vpow2.f32 %v1093_v1  ;;  %v1065_v35 = vsub.f32 %v4197_v44, %v1036_v32  ;;  %v1087_v57 = vmul.f32 1.442695, %v1064_v34  ;;  %v1066_v9 = vsub.f32 %v4200_v47, %v1036_v32 }
 0x2ff   : > { %3404 = vpow2.f32 %v1081_v12  ;;  %v1068_v1 = vsub.f32 %v4227_v62, %v4291_v30  ;;  %v1070_v47 = vsub.f32 %v4244_v18, %v4299_v37 }
 0x300   : > { %3406 = vpow2.f32 %v1097_v41  ;;  %v1089_v60 = vmul.f32 1.442695, %v1065_v35  ;;  %v1091_v2 = vmul.f32 1.442695, %v1066_v9  ;;  %v1072_v41 = vsub.f32 %v4260_v46, %v1048_v40  ;;  %v571_v40 = vld [vmem:[#allocation10] sm:$0xf] }
 0x301   : > { %3408 = vpow2.f32 %v1083_v26  ;;  %v1095_v12 = vmul.f32 1.442695, %v1068_v1  ;;  %v1099_v62 = vmul.f32 1.442695, %v1070_v47  ;;  %3135 = vmatpush3.msk.msra.mxu0 %vm581_vm13, %v571_v40 }
 0x302   : > { %3410 = vpow2.f32 %v1101_v33  ;;  %v1103_v3 = vmul.f32 1.442695, %v1072_v41  ;;  %v570_v33 = vld [vmem:[%s4060_s27] sm:$0xff]  ;;  %3237 = vmatprep.subr.bf16.mxu0 %v4886_v5  ;;  %s3712_s27 = smov 96  }
 0x303   : > { %3412 = vpow2.f32 %v1085_v13  ;;  %3137 = vmatmul.mubr.msk.f32.vlgmr.msra.gmra.mrb[0].mxu0 %vm577_vm14, %v570_v33 }
 0x304   : > { %v4312_v54 = vpop.eup %3394  ;;  %3414 = vpow2.f32 %v1087_v57  ;;  %3166 = vmatprep.mubr.msk.f32.mxu0 %vm3706_vm1, %v4884_v8 }
 0x305   : > { %v4315_v21 = vpop.eup %3396  ;;  %1122 = vperm.xlu1 %3392, %v4312_v54   ;;  %3416 = vpow2.f32 %v1089_v60 }
 0x306   : > { %1125 = vperm.xlu0 %3393, %v4315_v21   ;;  %v4323_v42 = vpop.eup %3398  ;;  %3418 = vpow2.f32 %v1091_v2 }
 0x307   : > { %v4328_v55 = vpop.eup %3400  ;;  %3420 = vpow2.f32 %v1095_v12 }
 0x308   : > { %v4331_v49 = vpop.eup %3402  ;;  %3422 = vpow2.f32 %v1099_v62 }
 0x309   : > { %1128 = vperm.xlu1 %3392, %v4323_v42   ;;  %v4335_v59 = vpop.eup %3404  ;;  %3424 = vpow2.f32 %v1103_v3 }
 0x30a   : > { %1152 = vperm.xlu0 %3393, %v4331_v49   ;;  %v4338_v51 = vpop.eup %3406 }
 0x30b   : > { %v4342_v63 = vpop.eup %3408 }
 0x30c   : > { %v4345_v44 = vpop.eup %3410 }
 0x30d   : > { %1131 = vperm.xlu1 %3392, %v4328_v55   ;;  %v4350_v4 = vpop.eup %3412 }
 0x30e   : > { %1158 = vperm.xlu0 %3393, %v4338_v51   ;;  %v4355_v14 = vpop.eup %3414 }
 0x30f   : > { %v4359_v30 = vpop.eup %3416 }
 0x310   : > { %v4362_v26 = vpop.eup %3418 }
 0x311   : > { %1134 = vperm.xlu1 %3392, %v4335_v59   ;;  %v4365_v18 = vpop.eup %3420 }
 0x312   : > { %1164 = vperm.xlu0 %3393, %v4345_v44   ;;  %v4368_v37 = vpop.eup %3422 }
 0x313   : > { %v4371_v46 = vpop.eup %3424 }
 0x315   : > { %1137 = vperm.xlu1 %3392, %v4342_v63  }
 0x319   : > { %1140 = vperm.xlu1 %3392, %v4350_v4  }
 0x31d   : > { %1143 = vperm.xlu1 %3392, %v4355_v14  }
 0x321   : > { %1146 = vperm.xlu1 %3392, %v4359_v30  }
 0x325   : > { %1149 = vperm.xlu1 %3392, %v4362_v26  }
 0x329   : > { %1155 = vperm.xlu1 %3392, %v4365_v18  }
 0x32d   : > { %1161 = vperm.xlu1 %3392, %v4368_v37  }
 0x331   : > { %1167 = vperm.xlu1 %3392, %v4371_v46  }
 0x384   : > { %v1123_v32 = vpop.permute.xlu1 %1122 }
 0x385   : > { %v1126_v60 = vpop.permute.xlu0 %1125  ;;  %v1172_v8 = vrot.slane %v1123_v32, %v4211_v52 }
 0x386   : > { %v1176_v33 = vrot.slane %v1126_v60, %v4205_v50 }
 0x388   : > { %v1129_v34 = vpop.permute.xlu1 %1128  ;;  %v1177_v32 = vsel %vm932_vm4, %v1176_v33, %v1172_v8 }
 0x389   : > { %v1153_v47 = vpop.permute.xlu0 %1152  ;;  %v1181_v5 = vrot.slane %v1129_v34, %v4211_v52 }
 0x38a   : > { %v1217_v34 = vrot.slane %v1153_v47, %v4211_v52 }
 0x38c   : > { %v1132_v13 = vpop.permute.xlu1 %1131 }
 0x38d   : > { %v1185_v41 = vrot.slane %v1132_v13, %v4205_v50  ;;  %v1159_v62 = vpop.permute.xlu0 %1158 }
 0x38f   : > { %v1186_v28 = vsel %vm932_vm4, %v1185_v41, %v1181_v5 }
 0x390   : > { %v1135_v35 = vpop.permute.xlu1 %1134  ;;  %v1241_v5 = vsel %vm997_vm5, %v1186_v28, %v1177_v32 }
 0x391   : > { %v1190_v43 = vrot.slane %v1135_v35, %v4211_v52 }
 0x394   : > { %v1138_v57 = vpop.permute.xlu1 %1137 }
 0x395   : > { %v1194_v3 = vrot.slane %v1138_v57, %v4205_v50 }
 0x397   : > { %v1195_v57 = vsel %vm932_vm4, %v1194_v3, %v1190_v43 }
 0x398   : > { %v1141_v9 = vpop.permute.xlu1 %1140  ;;  %v1242_v43 = vsel %vm999_vm6, %v1195_v57, %v1241_v5 }
 0x399   : > { %v1199_v13 = vrot.slane %v1141_v9, %v4211_v52  ;;  %v1165_v9 = vpop.permute.xlu0 %1164 }
 0x39c   : > { %v1144_v1 = vpop.permute.xlu1 %1143 }
 0x39d   : > { %v1203_v15 = vrot.slane %v1144_v1, %v4205_v50 }
 0x39f   : > { %v1204_v1 = vsel %vm932_vm4, %v1203_v15, %v1199_v13  ;;  %v1235_v15 = vrot.slane %v1165_v9, %v4211_v52 }
 0x3a0   : > { %v1147_v2 = vpop.permute.xlu1 %1146  ;;  %v1243_v3 = vsel %vm1001_vm7, %v1204_v1, %v1242_v43 }
 0x3a1   : > { %v1208_v60 = vrot.slane %v1147_v2, %v4211_v52 }
 0x3a4   : > { %v1150_v12 = vpop.permute.xlu1 %1149 }
 0x3a5   : > { %v1212_v16 = vrot.slane %v1150_v12, %v4205_v50  ;;  %v1226_v12 = vrot.slane %v1159_v62, %v4211_v52 }
 0x3a7   : > { %v1213_v41 = vsel %vm932_vm4, %v1212_v16, %v1208_v60 }
 0x3a8   : > { %v1156_v40 = vpop.permute.xlu1 %1155 }
 0x3a9   : > { %v1221_v22 = vrot.slane %v1156_v40, %v4205_v50 }
 0x3ab   : > { %v1222_v2 = vsel %vm932_vm4, %v1221_v22, %v1217_v34 }
 0x3ac   : > { %v1162_v19 = vpop.permute.xlu1 %1161 }
 0x3ad   : > { %v1230_v35 = vrot.slane %v1162_v19, %v4205_v50  ;;  %v1244_v19 = vsel %vm1003_vm8, %v1213_v41, %v1243_v3 }
 0x3ae   : > { %v1245_v28 = vsel %vm1005_vm9, %v1222_v2, %v1244_v19 }
 0x3af   : > { %v1231_v8 = vsel %vm932_vm4, %v1230_v35, %v1226_v12 }
 0x3b0   : > { %v1168_v47 = vpop.permute.xlu1 %1167  ;;  %v1246_v16 = vsel %vm1007_vm10, %v1231_v8, %v1245_v28  ;;  %v1479_v28 = vld [vmem:[%s4868_s7 + $0x8] sm:$0xff] }
 0x3b1   : > { %v1239_v62 = vrot.slane %v1168_v47, %v4205_v50 }
 0x3b3   : > { %v1240_v40 = vsel %vm932_vm4, %v1239_v62, %v1235_v15  ;;  %v1478_v62 = vld [vmem:[%s4868_s7] sm:$0xff] }
 0x3b4   : > { %v1247_v33 = vsel %vm1009_vm11, %v1240_v40, %v1246_v16  ;;  %v3250_v40 = vpack.c.bf16 %v1479_v28, %v1478_v62 }
 0x3b5   : > { %v1249_v22 = vsel %vm1012_vm12, %v1247_v33, 0.0  ;;  %v1484_v33 = vld [vmem:[%s4868_s7 + $0x30] sm:$0xff] }
 0x3b6   : > { %1250 = vadd.xlane.f32.xlu0 %v1249_v22  ;;  %v1485_v22 = vld [vmem:[%s4868_s7 + $0x38] sm:$0xff]  ;;  %3251 = vmatpush3.bf16.msra.mxu1 %v3250_v40 }
 0x3d6   : > { %v651_v47 = vpop.f32.mrb[0].mxu0 }
 0x3d7   : > { %v3138_v19 = vpop.f32.mrb[1].mxu0 }
 0x443   : > { %v1251_v13 = vpop.xlane.xlu0 %1250 }
 0x444   : > { %3426 = vrcp.f32 %v1251_v13  ;;  %v4932_v13 = vmov 0.0|0.0  }
 0x445   : > { %3252 = vmatprep.subr.bf16.mxu1 %v4932_v13 }
 0x44e   : > { %v3427_v57 = vpop.eup %3426 }
 0x44f   : > { %v1273_v60 = vrot.slane %v3427_v57, %v4319_v23  ;;  %v1257_v32 = vrot.slane %v3427_v57, %v4087_v20  ;;  %v1285_v1 = vrot.slane %v3427_v57, %v4296_v38  ;;  %v1261_v5 = vrot.slane %v3427_v57, %v4274_v7 }
 0x451   : > { %v1302_v50 = vmul.f32 %v4359_v30, %v1273_v60  ;;  %v1294_v34 = vmul.f32 %v4312_v54, %v1257_v32  ;;  %v1308_v35 = vmul.f32 %v4345_v44, %v1285_v1  ;;  %v1295_v12 = vmul.f32 %v4315_v21, %v1257_v32  ;;  %v569_v32 = vld [vmem:[#allocation3] sm:$0xff] }
 0x452   : > { %v1296_v9 = vmul.f32 %v4323_v42, %v1261_v5  ;;  %v1297_v41 = vmul.f32 %v4328_v55, %v1261_v5  ;;  %v1265_v30 = vrot.slane %v3427_v57, %v4284_v25  ;;  %v1269_v44 = vrot.slane %v3427_v57, %v4304_v58  ;;  %v1651_v5 = vld [vmem:[%s4868_s7 + $0x68] sm:$0xff] }
 0x453   : > { %1352 = vperm.xlu0 %3393, %v1302_v50   ;;  %1312 = vperm.xlu1 %3392, %v1294_v34   ;;  %v1303_v42 = vmul.f32 %v4362_v26, %v1273_v60  ;;  %v1277_v55 = vrot.slane %v3427_v57, %v4279_v17  ;;  %v3071_v26 = vld [vmem:[#allocation10 + $0x4] ss:$0 sm:$0xff]  ;;  %v3244_v50 = vpack.c.bf16 %v1485_v22, %v1484_v33 }
 0x454   : > { %v1298_v54 = vmul.f32 %v4335_v59, %v1265_v30  ;;  %v1299_v43 = vmul.f32 %v4342_v63, %v1265_v30  ;;  %v1300_v21 = vmul.f32 %v4350_v4, %v1269_v44  ;;  %v1301_v2 = vmul.f32 %v4355_v14, %v1269_v44  ;;  %v1649_v60 = vld [vmem:[%s4868_s7 + $0x58] sm:$0xff] }
 0x455   : > { %v1304_v3 = vmul.f32 %v4331_v49, %v1277_v55  ;;  %v1305_v59 = vmul.f32 %v4365_v18, %v1277_v55  ;;  %v1281_v63 = vrot.slane %v3427_v57, %v4288_v27  ;;  %v1309_v14 = vmul.f32 %v4371_v46, %v1285_v1  ;;  %v1480_v49 = vld [vmem:[%s4868_s7 + $0x10] sm:$0xff]  ;;  %v1482_v18 = vld [vmem:[%s4868_s7 + $0x20] sm:$0xff]  ;;  %v1483_v46 = vld [vmem:[%s4868_s7 + $0x28] sm:$0xff] }
 0x456   : > { %v652_v15 = vadd.f32 %v3071_v26, %v651_v47  ;;  %v3241_v16 = vpack.c.bf16 %v1483_v46, %v1482_v18  ;;  %v1648_v57 = vld [vmem:[%s4868_s7 + $0x50] sm:$0xff]  ;;  %v1486_v1 = vld [vmem:[%s4868_s7 + $0x40] sm:$0xff] }
 0x457   : > { %1382 = vperm.xlu0 %3393, %v1308_v35   ;;  %1317 = vperm.xlu1 %3392, %v1295_v12   ;;  %v1306_v8 = vmul.f32 %v4338_v51, %v1281_v63  ;;  %v1307_v4 = vmul.f32 %v4368_v37, %v1281_v63  ;;  %v1481_v51 = vld [vmem:[%s4868_s7 + $0x18] sm:$0xff]  ;;  %v3253_v34 = vpack.c.bf16 %v1649_v60, %v1648_v57  ;;  %v1487_v35 = vld [vmem:[%s4868_s7 + $0x48] sm:$0xff]  ;;  %v1650_v12 = vld [vmem:[%s4868_s7 + $0x60] sm:$0xff] }
 0x458   : > { %3428 = vtanh.f32 %v652_v15  ;;  %v3238_v37 = vpack.c.bf16 %v1481_v51, %v1480_v49  ;;  %v3256_v30 = vpack.c.bf16 %v1651_v5, %v1650_v12 }
 0x45a   : > { %3239 = vmatpush3.bf16.msra.mxu0 %v3238_v37 }
 0x45b   : > { %1322 = vperm.xlu1 %3392, %v1296_v9   ;;  %3240 = vmatprep.subr.bf16.mxu0 %v4932_v13 }
 0x45e   : > { %3242 = vmatpush3.bf16.msra.mxu0 %v3241_v16 }
 0x45f   : > { %1327 = vperm.xlu1 %3392, %v1297_v41   ;;  %3243 = vmatprep.subr.bf16.mxu0 %v4932_v13  ;;  %v3247_v41 = vpack.c.bf16 %v1487_v35, %v1486_v1 }
 0x462   : > { %v3429_v9 = vpop.eup %3428  ;;  %3245 = vmatpush3.bf16.msra.mxu0 %v3244_v50 }
 0x463   : > { %1332 = vperm.xlu1 %3392, %v1298_v54   ;;  %3174 = vmatmul.mubr.msk.f32.vlgmr.msra.gmra.mrb[2].mxu1 %vm1012_vm12, %v3429_v9  ;;  %v4933_v54 = vmov 0.0  }
 0x464   : > { %3254 = vmatpush3.bf16.msra.mxu1 %v3253_v34  ;;  %3246 = vmatprep.subr.bf16.mxu0 %v4932_v13 }
 0x465   : > { %3255 = vmatprep.subr.bf16.mxu1 %v4932_v13  ;;  %3184 = vmatprep.mubr.msk.f32.mxu1 %vm3706_vm1, %v4933_v54 }
 0x466   : > { %3248 = vmatpush3.bf16.msra.mxu0 %v3247_v41 }
 0x467   : > { %1337 = vperm.xlu1 %3392, %v1299_v43   ;;  %3258 = vmatprep.subr.bf16.mxu0 %v4932_v13 }
 0x468   : > { %3257 = vmatpush3.bf16.msra.mxu1 %v3256_v30 }
 0x469   : > { %3264 = vmatprep.subr.bf16.mxu1 %v4932_v13 }
 0x46b   : > { %1342 = vperm.xlu1 %3392, %v1300_v21   ;;  %3185 = vmatmul.mubr.msk.f32.vlgmr.msra.gmra.mrb[4].mxu1 %vm676_vm2, %v4072_v10 }
 0x46c   : > { %3206 = vmatprep.mubr.msk.f32.mxu1 %vm3706_vm1, %v4933_v54 }
 0x46f   : > { %1347 = vperm.xlu1 %3392, %v1301_v2  }
 0x473   : > { %1357 = vperm.xlu1 %3392, %v1303_v42  }
 0x477   : > { %1362 = vperm.xlu1 %3392, %v1304_v3  }
 0x47b   : > { %1367 = vperm.xlu1 %3392, %v1305_v59  }
 0x47f   : > { %1372 = vperm.xlu1 %3392, %v1306_v8  }
 0x483   : > { %1377 = vperm.xlu1 %3392, %v1307_v4  }
 0x487   : > { %1387 = vperm.xlu1 %3392, %v1309_v14  }
 0x48b   : > { %1737 = vrot.lane.b32.xlu1 %v569_v32, %s3710_s10 }
 0x4d2   : > { %v1313_v43 = vpop.permute.xlu1 %1312  ;;  %v1353_v4 = vpop.permute.xlu0 %1352 }
 0x4d3   : > { %v1390_v19 = vmul.f32 %v1313_v43, %v4091_v24 }
 0x4d6   : > { %v1318_v44 = vpop.permute.xlu1 %1317 }
 0x4d7   : > { %v1391_v14 = vmul.f32 %v1318_v44, %v4097_v29 }
 0x4d9   : > { %v1407_v29 = vsel %vm856_vm3, %v1391_v14, 0.0 }
 0x4da   : > { %v1323_v21 = vpop.permute.xlu1 %1322 }
 0x4db   : > { %v1392_v10 = vmul.f32 %v1323_v21, %v4101_v31 }
 0x4dd   : > { %v1415_v31 = vsel %vm856_vm3, %v1392_v10, 0.0  ;;  %v4935_v10 = vld [vmem:[#allocation24_spill] sm:$0xff] }
 0x4de   : > { %v1328_v2 = vpop.permute.xlu1 %1327 }
 0x4df   : > { %v1393_v63 = vmul.f32 %v1328_v2, %v4108_v36 }
 0x4e1   : > { %v1416_v49 = vsel %vm856_vm3, %v1393_v63, 0.0  ;;  %v4934_v63 = vld [vmem:[#allocation23_spill] sm:$0xff] }
 0x4e2   : > { %v1333_v42 = vpop.permute.xlu1 %1332 }
 0x4e3   : > { %v1394_v47 = vmul.f32 %v1333_v42, %v4113_v39  ;;  %v1417_v39 = vadd.f32 %v1416_v49, %v1415_v31  ;;  %v1383_v42 = vpop.permute.xlu0 %1382 }
 0x4e5   : > { %v1424_v37 = vsel %vm856_vm3, %v1394_v47, 0.0  ;;  %v1418_v22 = vrot.slane %v1417_v39, 4 }
 0x4e6   : > { %v1338_v55 = vpop.permute.xlu1 %1337 }
 0x4e7   : > { %v1395_v8 = vmul.f32 %v1338_v55, %v4120_v45  ;;  %v1398_v45 = vmul.f32 %v1353_v4, %v4124_v48  ;;  %v1419_v5 = vadd.f32 %v1418_v22, %v1417_v39 }
 0x4e9   : > { %v1425_v18 = vsel %vm856_vm3, %v1395_v8, 0.0  ;;  %v1442_v48 = vsel %vm856_vm3, %v1398_v45, 0.0  ;;  %v1420_v55 = vrot.slane %v1419_v5, 2 }
 0x4ea   : > { %v1343_v3 = vpop.permute.xlu1 %1342  ;;  %v1426_v62 = vadd.f32 %v1425_v18, %v1424_v37  ;;  %v4936_v18 = vld [vmem:[#allocation25_spill] sm:$0xff] }
 0x4eb   : > { %v1396_v51 = vmul.f32 %v1343_v3, %v4136_v56  ;;  %v1406_v56 = vsel %vm856_vm3, %v1390_v19, 0.0  ;;  %v1421_v49 = vadd.f32 %v1420_v55, %v1419_v5 }
 0x4ec   : > { %v1408_v28 = vadd.f32 %v1407_v29, %v1406_v56  ;;  %v1427_v60 = vrot.slane %v1426_v62, 4 }
 0x4ed   : > { %v1422_v56 = vrot.slane %v1421_v49, 1 }
 0x4ee   : > { %v1348_v59 = vpop.permute.xlu1 %1347  ;;  %v1409_v50 = vrot.slane %v1408_v28, 4  ;;  %v1428_v30 = vadd.f32 %v1427_v60, %v1426_v62 }
 0x4ef   : > { %v1397_v26 = vmul.f32 %v1348_v59, %v4143_v61  ;;  %v1423_v60 = vadd.f32 %v1422_v56, %v1421_v49  ;;  %v1765_v56 = vld [vmem:[%s4937_s19] sm:$0xff] }
 0x4f0   : > { %v1410_v43 = vadd.f32 %v1409_v50, %v1408_v28  ;;  %v1429_v59 = vrot.slane %v1428_v30, 2 }
 0x4f1   : > { %v1434_v61 = vsel %vm856_vm3, %v1397_v26, 0.0  ;;  %v1404_v26 = vmul.f32 %v1383_v42, %v4935_v10 }
 0x4f2   : > { %v1358_v15 = vpop.permute.xlu1 %1357  ;;  %v1411_v4 = vrot.slane %v1410_v43, 2  ;;  %v1430_v45 = vadd.f32 %v1429_v59, %v1428_v30 }
 0x4f3   : > { %v1399_v36 = vmul.f32 %v1358_v15, %v4131_v53  ;;  %v1433_v53 = vsel %vm856_vm3, %v1396_v51, 0.0  ;;  %v1469_v37 = vsel %vm856_vm3, %v1404_v26, 0.0 }
 0x4f4   : > { %v1435_v40 = vadd.f32 %v1434_v61, %v1433_v53  ;;  %v1412_v31 = vadd.f32 %v1411_v4, %v1410_v43  ;;  %v1431_v28 = vrot.slane %v1430_v45, 1 }
 0x4f5   : > { %v1443_v24 = vsel %vm856_vm3, %v1399_v36, 0.0 }
 0x4f6   : > { %v1363_v46 = vpop.permute.xlu1 %1362  ;;  %v1444_v16 = vadd.f32 %v1443_v24, %v1442_v48  ;;  %v1436_v34 = vrot.slane %v1435_v40, 4 }
 0x4f7   : > { %v1400_v33 = vmul.f32 %v1363_v46, %v4147_v0 }
 0x4f8   : > { %v1445_v1 = vrot.slane %v1444_v16, 4  ;;  %v1437_v44 = vadd.f32 %v1436_v34, %v1435_v40  ;;  %v1413_v40 = vrot.slane %v1412_v31, 1 }
 0x4f9   : > { %v1451_v35 = vsel %vm856_vm3, %v1400_v33, 0.0 }
 0x4fa   : > { %v1368_v57 = vpop.permute.xlu1 %1367  ;;  %v1446_v0 = vadd.f32 %v1445_v1, %v1444_v16  ;;  %v1438_v14 = vrot.slane %v1437_v44, 2  ;;  %v1432_v1 = vadd.f32 %v1431_v28, %v1430_v45  ;;  %v2415_v28 = vld [vmem:[%s4937_s19 + $0x48] sm:$0xff] }
 0x4fb   : > { %v1401_v32 = vmul.f32 %v1368_v57, %v4154_v6 }
 0x4fc   : > { %v1447_v47 = vrot.slane %v1446_v0, 2  ;;  %v1439_v61 = vadd.f32 %v1438_v14, %v1437_v44 }
 0x4fd   : > { %v1452_v12 = vsel %vm856_vm3, %v1401_v32, 0.0 }
 0x4fe   : > { %v1453_v9 = vadd.f32 %v1452_v12, %v1451_v35  ;;  %v1373_v41 = vpop.permute.xlu1 %1372  ;;  %v1448_v24 = vadd.f32 %v1447_v47, %v1446_v0  ;;  %v1440_v16 = vrot.slane %v1439_v61, 1  ;;  %v1414_v35 = vadd.f32 %v1413_v40, %v1412_v31  ;;  %v1767_v40 = vld [vmem:[%s4937_s19 + $0x10] sm:$0xff] }
 0x4ff   : > { %v1402_v2 = vmul.f32 %v1373_v41, %v4158_v11 }
 0x500   : > { %v1454_v21 = vrot.slane %v1453_v9, 4  ;;  %v1449_v57 = vrot.slane %v1448_v24, 1  ;;  %v1441_v12 = vadd.f32 %v1440_v16, %v1439_v61  ;;  %v1496_v30 = vsel %vm997_vm5, %v1423_v60, %v1414_v35  ;;  %v1768_v16 = vld [vmem:[%s4937_s19 + $0x18] sm:$0xff] }
 0x501   : > { %v1460_v15 = vsel %vm856_vm3, %v1402_v2, 0.0  ;;  %v3262_v60 = vpack.c.bf16 %v1768_v16, %v1767_v40 }
 0x502   : > { %v1455_v6 = vadd.f32 %v1454_v21, %v1453_v9  ;;  %v1378_v3 = vpop.permute.xlu1 %1377  ;;  %v1450_v41 = vadd.f32 %v1449_v57, %v1448_v24  ;;  %v1497_v21 = vsel %vm999_vm6, %v1432_v1, %v1496_v30  ;;  %v2417_v57 = vld [vmem:[%s4937_s19 + $0x58] sm:$0xff] }
 0x503   : > { %v1403_v8 = vmul.f32 %v1378_v3, %v4934_v63  ;;  %v1498_v2 = vsel %vm1001_vm7, %v1441_v12, %v1497_v21 }
 0x504   : > { %v1456_v51 = vrot.slane %v1455_v6, 2  ;;  %v1499_v55 = vsel %vm1003_vm8, %v1450_v41, %v1498_v2  ;;  %v4939_v2 = vld [vmem:[#allocation22_spill] sm:$0xff] }
 0x505   : > { %v1461_v19 = vsel %vm856_vm3, %v1403_v8, 0.0 }
 0x506   : > { %v1462_v36 = vadd.f32 %v1461_v19, %v1460_v15  ;;  %v1388_v11 = vpop.permute.xlu1 %1387  ;;  %v1457_v62 = vadd.f32 %v1456_v51, %v1455_v6  ;;  %v3078_v19 = vld [vmem:[%s4868_s7 + $0x70] ss:$0 sm:$0xff] }
 0x507   : > { %v1405_v29 = vmul.f32 %v1388_v11, %v4936_v18 }
 0x508   : > { %v1463_v39 = vrot.slane %v1462_v36, 4  ;;  %v1458_v32 = vrot.slane %v1457_v62, 1 }
 0x509   : > { %v1470_v46 = vsel %vm856_vm3, %v1405_v29, 0.0 }
 0x50a   : > { %v1464_v53 = vadd.f32 %v1463_v39, %v1462_v36  ;;  %v1471_v48 = vadd.f32 %v1470_v46, %v1469_v37  ;;  %v1459_v43 = vadd.f32 %v1458_v32, %v1457_v62  ;;  %v1738_v39 = vpop.permute.xlu1 %1737  ;;  %v1766_v62 = vld [vmem:[%s4937_s19 + $0x8] sm:$0xff] }
 0x50c   : > { %v1465_v33 = vrot.slane %v1464_v53, 2  ;;  %v1472_v22 = vrot.slane %v1471_v48, 4  ;;  %v1500_v3 = vsel %vm1005_vm9, %v1459_v43, %v1499_v55 }
 0x50e   : > { %v1466_v50 = vadd.f32 %v1465_v33, %v1464_v53  ;;  %v1473_v34 = vadd.f32 %v1472_v22, %v1471_v48  ;;  %v2414_v53 = vld [vmem:[%s4937_s19 + $0x40] sm:$0xff]  ;;  %v3259_v48 = vpack.c.bf16 %v1766_v62, %v1765_v56  ;;  %v2416_v22 = vld [vmem:[%s4937_s19 + $0x50] sm:$0xff]  ;;  %v4641_v62 = vld [vmem:[%s4940_s22 + $0x28] sm:$0xff] }
 0x50f   : > { %v3265_v33 = vpack.c.bf16 %v2415_v28, %v2414_v53  ;;  %v3268_v32 = vpack.c.bf16 %v2417_v57, %v2416_v22  ;;  %v4656_v57 = vld [vmem:[%s4940_s22 + $0x38] sm:$0xff] }
 0x510   : > { %v1467_v5 = vrot.slane %v1466_v50, 1  ;;  %v1474_v9 = vrot.slane %v1473_v34, 2 }
 0x511   : > { %3266 = vmatpush3.bf16.msra.mxu1 %v3265_v33 }
 0x512   : > { %v1475_v44 = vadd.f32 %v1474_v9, %v1473_v34  ;;  %v1468_v0 = vadd.f32 %v1467_v5, %v1466_v50  ;;  %3267 = vmatprep.subr.bf16.mxu1 %v4932_v13  ;;  %v4573_v34 = vld [vmem:[%s4938_s13] sm:$0xff]  ;;  %s4943_s13 = sld [smem:[#allocation34_spill]] }
 0x513   : > { %v1978_v1 = vrot.slane %v4573_v34, %v4274_v7  ;;  %v1985_v35 = vrot.slane %v4573_v34, %v4284_v25  ;;  %v1999_v12 = vrot.slane %v4573_v34, %v4319_v23  ;;  %v1971_v41 = vrot.slane %v4573_v34, %v4087_v20 }
 0x514   : > { %v1476_v42 = vrot.slane %v1475_v44, 1  ;;  %v1501_v59 = vsel %vm1007_vm10, %v1468_v0, %v1500_v3  ;;  %v1992_v30 = vrot.slane %v4573_v34, %v4304_v58  ;;  %v2006_v43 = vrot.slane %v4573_v34, %v4279_v17 }
 0x515   : > { %3269 = vmatpush3.bf16.msra.mxu1 %v3268_v32  ;;  %v4662_v32 = vld [vmem:[%s4940_s22 + $0x30] sm:$0xff] }
 0x516   : > { %v1477_v6 = vadd.f32 %v1476_v42, %v1475_v44  ;;  %3270 = vmatprep.subr.bf16.mxu1 %v4932_v13 }
 0x518   : > { %v1502_v63 = vsel %vm1009_vm11, %v1477_v6, %v1501_v59 }
 0x519   : > { %3167 = vmatmul.mubr.msk.f32.vlgmr.msra.gmra.mrb[2].mxu0 %vm856_vm3, %v1502_v63 }
 0x51a   : > { %3195 = vmatprep.mubr.msk.f32.mxu0 %vm3706_vm1, %v4933_v54  ;;  %3260 = vmatpush3.bf16.msra.mxu0 %v3259_v48  ;;  %v4646_v48 = vld [vmem:[%s4940_s22 + $0x20] sm:$0xff] }
 0x51b   : > { %3261 = vmatprep.subr.bf16.mxu0 %v4932_v13 }
 0x51e   : > { %3263 = vmatpush3.bf16.msra.mxu0 %v3262_v60 }
 0x51f   : > { %3276 = vmatprep.subr.bf16.mxu0 %v4932_v13 }
 0x536   : > { %v1644_v8 = vpop.f32.mrb[2].mxu1 }
 0x537   : > { %v3175_v4 = vpop.f32.mrb[3].mxu1 }
 0x53e   : > { %v1718_v14 = vpop.f32.mrb[4].mxu1 }
 0x53f   : > { %v3186_v10 = vpop.f32.mrb[5].mxu1 }
 0x5ec   : > { %v1571_v26 = vpop.f32.mrb[2].mxu0 }
 0x5ed   : > { %v1645_v47 = vadd.f32 %v1644_v8, %v1571_v26  ;;  %v3168_v15 = vpop.f32.mrb[3].mxu0  ;;  %v4614_v26 = vld [vmem:[%s4940_s22 + $0x8] sm:$0xff] }
 0x5ef   : > { %v1722_v49 = vadd.f32 %v1718_v14, %v1645_v47  ;;  %v4607_v14 = vld [vmem:[%s4940_s22] sm:$0xff] }
 0x5f1   : > { %v1728_v51 = vadd.f32 %v3078_v19, %v1722_v49 }
 0x5f3   : > { %3430 = vtanh.f32 %v1728_v51  ;;  %v3079_v11 = vmul.f32 -1.442695, %v1728_v51 }
 0x5f5   : > { %3432 = vpow2.f32 %v3079_v11  ;;  %v4628_v11 = vld [vmem:[%s4940_s22 + $0x10] sm:$0xff] }
 0x5fd   : > { %v3431_v36 = vpop.eup %3430 }
 0x5fe   : > { %1742 = vrot.lane.b32.xlu0 %v3431_v36, %s3711_s29  ;;  %v4623_v36 = vld [vmem:[%s4940_s22 + $0x18] sm:$0xff] }
 0x5ff   : > { %v3433_v45 = vpop.eup %3432 }
 0x600   : > { %v1732_v18 = vadd.f32 1.0, %v3433_v45 }
 0x602   : > { %3434 = vrcp.f32 %v1732_v18 }
 0x60c   : > { %v3435_v29 = vpop.eup %3434 }
 0x60d   : > { %v1740_v37 = vmul.f32 %v3435_v29, %v1738_v39 }
 0x670   : > { %v1743_v31 = vpop.permute.xlu0 %1742 }
 0x671   : > { %v1745_v61 = vmul.f32 %v3435_v29, %v1743_v31 }
 0x673   : > { %1747 = vrot.lane.b32.xlu0 %v1745_v61, %s3710_s10 }
 0x6e5   : > { %v1748_v24 = vpop.permute.xlu0 %1747 }
 0x6e6   : > { %v4538_v46 = vadd.f32 %v1748_v24, %v1740_v37 }
 0x6e8   : > { %3436 = vtanh.f32 %v4538_v46 }
 0x6f2   : > { %v3437_v50 = vpop.eup %3436 }
 0x6f3   : > { %1753 = vrot.lane.b32.xlu1 %v3437_v50, %s3711_s29 }
 0x6f7   : > { %1980 = vbcast.lane.b32.xlu1 %v1978_v1, 256 }
 0x6fb   : > { %1987 = vbcast.lane.b32.xlu1 %v1985_v35, 256 }
 0x6ff   : > { %2001 = vbcast.lane.b32.xlu1 %v1999_v12, 256 }
 0x765   : > { %v1754_v5 = vpop.permute.xlu1 %1753 }
 0x766   : > { %v1756_v9 = vmul.f32 %v3435_v29, %v1754_v5 }
 0x768   : > { %1770 = vrot.lane.b32.xlu0 %v1756_v9, %s3710_s10  ;;  %s4944_s10 = smov %s4943_s13 }
 0x76c   : > { %1973 = vbcast.lane.b32.xlu0 %v1971_v41, 256  ;;  %v2013_v41 = vrot.slane %v4573_v34, %v4288_v27 }
 0x770   : > { %1994 = vbcast.lane.b32.xlu0 %v1992_v30, 256  ;;  %v2020_v30 = vrot.slane %v4573_v34, %v4296_v38 }
 0x774   : > { %2008 = vbcast.lane.b32.xlu0 %v2006_v43, 256  ;;  %v1981_v43 = vpop.permute.xlu1 %1980 }
 0x7da   : > { %v4588_v44 = vpop.permute.xlu0 %1770 }
 0x7db   : > { %2784 = vst.msk [vmem:[#allocation2] sm:$0xff] %vm676_vm2, %v4588_v44  ;;  %3196 = vmatmul.mubr.msk.f32.vlgmr.msra.gmra.mrb[4].mxu0 %vm676_vm2, %v4588_v44  ;;  %3207 = vmatmul.mubr.msk.f32.vlgmr.msra.gmra.mrb[6].mxu1 %vm676_vm2, %v4588_v44 }
 0x7dc   : > { %3217 = vmatprep.mubr.msk.f32.mxu1 %vm3706_vm1, %v4933_v54  ;;  %3228 = vmatprep.mubr.msk.f32.mxu0 %vm3706_vm1, %v4933_v54  ;;  %vm2846_vm1 = vcmask 850944  }
 0x8ae   : > { %v1840_v21 = vpop.f32.mrb[4].mxu0 }
 0x8af   : > { %v1845_v0 = vcombine.high %v1840_v21, %v1840_v21  ;;  %v1852_v42 = vrot.slane %v1840_v21, %v4939_v2  ;;  %v3197_v55 = vpop.f32.mrb[5].mxu0  ;;  %v1974_v21 = vpop.permute.xlu0 %1973 }
 0x8b1   : > { %v1859_v6 = vrot.slane %v1845_v0, %v4939_v2  ;;  %v1860_v3 = vcombine.high %v1852_v42, %v1852_v42  ;;  %v1868_v59 = vrot.slane %v1852_v42, %v4939_v2  ;;  %v1988_v0 = vpop.permute.xlu1 %1987 }
 0x8b3   : > { %v1861_v63 = vcombine.high %v1859_v6, %v1859_v6  ;;  %v1882_v8 = vrot.slane %v1860_v3, %v4939_v2  ;;  %v1890_v4 = vcombine.high %v1868_v59, %v1868_v59  ;;  %v1875_v54 = vrot.slane %v1859_v6, %v4939_v2  ;;  %v1995_v42 = vpop.permute.xlu0 %1994 }
 0x8b4   : > { %v1897_v10 = vrot.slane %v1868_v59, %v4087_v20 }
 0x8b5   : > { %v1901_v47 = vrot.slane %v1882_v8, %v4087_v20  ;;  %v1892_v15 = vcombine.high %v1882_v8, %v1882_v8  ;;  %v1905_v19 = vrot.slane %v1890_v4, %v4087_v20  ;;  %v1889_v49 = vrot.slane %v1861_v63, %v4939_v2  ;;  %v2002_v55 = vpop.permute.xlu1 %2001 }
 0x8b6   : > { %v1934_v51 = vmul.f32 %v1897_v10, %v4607_v14  ;;  %v1913_v61 = vrot.slane %v1875_v54, %v4087_v20  ;;  %v1891_v53 = vcombine.high %v1875_v54, %v1875_v54 }
 0x8b7   : > { %v1935_v45 = vmul.f32 %v1901_v47, %v4614_v26  ;;  %v1909_v18 = vrot.slane %v1892_v15, %v4087_v20  ;;  %v1917_v31 = vrot.slane %v1889_v49, %v4087_v20  ;;  %v1893_v39 = vcombine.high %v1889_v49, %v1889_v49  ;;  %v2009_v6 = vpop.permute.xlu0 %2008 }
 0x8b8   : > { %v1942_v29 = vsel %vm676_vm2, %v1934_v51, 0.0  ;;  %v1936_v56 = vmul.f32 %v1905_v19, %v4628_v11  ;;  %v1938_v22 = vmul.f32 %v1913_v61, %v4646_v48  ;;  %v1921_v60 = vrot.slane %v1891_v53, %v4087_v20 }
 0x8b9   : > { %1943 = vadd.xlane.f32.xlu1 %v1942_v29  ;;  %v1945_v37 = vsel %vm676_vm2, %v1935_v45, 0.0  ;;  %v1937_v24 = vmul.f32 %v1909_v18, %v4623_v36  ;;  %v1939_v40 = vmul.f32 %v1917_v31, %v4641_v62  ;;  %v1925_v16 = vrot.slane %v1893_v39, %v4087_v20 }
 0x8ba   : > { %1946 = vadd.xlane.f32.xlu0 %v1945_v37  ;;  %v1948_v33 = vsel %vm676_vm2, %v1936_v56, 0.0  ;;  %v1954_v35 = vsel %vm676_vm2, %v1938_v22, 0.0  ;;  %v1940_v12 = vmul.f32 %v1921_v60, %v4662_v32 }
 0x8bb   : > { %v1951_v28 = vsel %vm676_vm2, %v1937_v24, 0.0  ;;  %v1957_v50 = vsel %vm676_vm2, %v1939_v40, 0.0  ;;  %v1941_v1 = vmul.f32 %v1925_v16, %v4656_v57 }
 0x8bc   : > { %v1960_v9 = vsel %vm676_vm2, %v1940_v12, 0.0 }
 0x8bd   : > { %1952 = vadd.xlane.f32.xlu1 %v1951_v28  ;;  %v1963_v5 = vsel %vm676_vm2, %v1941_v1, 0.0 }
 0x8be   : > { %1949 = vadd.xlane.f32.xlu0 %v1948_v33 }
 0x8c1   : > { %1958 = vadd.xlane.f32.xlu1 %v1957_v50 }
 0x8c2   : > { %1955 = vadd.xlane.f32.xlu0 %v1954_v35 }
 0x8c5   : > { %1964 = vadd.xlane.f32.xlu1 %v1963_v5 }
 0x8c6   : > { %1961 = vadd.xlane.f32.xlu0 %v1960_v9 }
 0x8d6   : > { %2015 = vbcast.lane.b32.xlu1 %v2013_v41, 256 }
 0x8dc   : > { %2022 = vbcast.lane.b32.xlu0 %v2020_v30, 256 }
 0x946   : > { %v1944_v3 = vpop.xlane.xlu1 %1943 }
 0x947   : > { %v2032_v59 = vadd.f32 %v1974_v21, %v1944_v3  ;;  %v1947_v63 = vpop.xlane.xlu0 %1946 }
 0x948   : > { %v2033_v8 = vadd.f32 %v1981_v43, %v1947_v63 }
 0x949   : > { %2049 = vperm.xlu1 %3392, %v2032_v59  }
 0x94a   : > { %v1953_v4 = vpop.xlane.xlu1 %1952  ;;  %2052 = vperm.xlu0 %3393, %v2033_v8  }
 0x94b   : > { %v1950_v54 = vpop.xlane.xlu0 %1949  ;;  %v2035_v10 = vadd.f32 %v1995_v42, %v1953_v4 }
 0x94c   : > { %v2034_v47 = vadd.f32 %v1988_v0, %v1950_v54 }
 0x94e   : > { %v1959_v15 = vpop.xlane.xlu1 %1958  ;;  %2055 = vperm.xlu1 %3392, %v2034_v47   ;;  %2058 = vperm.xlu0 %3393, %v2035_v10  }
 0x94f   : > { %v1956_v34 = vpop.xlane.xlu0 %1955  ;;  %v2037_v19 = vadd.f32 %v2009_v6, %v1959_v15 }
 0x950   : > { %v2036_v49 = vadd.f32 %v2002_v55, %v1956_v34 }
 0x952   : > { %v1965_v51 = vpop.xlane.xlu1 %1964  ;;  %2061 = vperm.xlu1 %3392, %v2036_v49   ;;  %2064 = vperm.xlu0 %3393, %v2037_v19  }
 0x953   : > { %v1962_v45 = vpop.xlane.xlu0 %1961 }
 0x956   : > { %v2016_v18 = vpop.permute.xlu1 %2015 }
 0x957   : > { %v2038_v29 = vadd.f32 %v2016_v18, %v1962_v45  ;;  %v2023_v31 = vpop.permute.xlu0 %2022 }
 0x958   : > { %v2039_v61 = vadd.f32 %v2023_v31, %v1965_v51 }
 0x959   : > { %2067 = vperm.xlu1 %3392, %v2038_v29  }
 0x95a   : > { %2070 = vperm.xlu0 %3393, %v2039_v61  }
 0x9c8   : > { %v2050_v39 = vpop.permute.xlu1 %2049 }
 0x9c9   : > { %v2053_v37 = vpop.permute.xlu0 %2052  ;;  %v2075_v40 = vrot.slane %v2050_v39, %v4211_v52 }
 0x9ca   : > { %v2079_v53 = vrot.slane %v2053_v37, %v4211_v52 }
 0x9cc   : > { %v2104_v33 = vsel %vm997_vm5, %v2079_v53, %v2075_v40 }
 0x9cd   : > { %v2059_v24 = vpop.permute.xlu0 %2058  ;;  %v2056_v56 = vpop.permute.xlu1 %2055 }
 0x9ce   : > { %v2083_v28 = vrot.slane %v2056_v56, %v4211_v52  ;;  %v2087_v22 = vrot.slane %v2059_v24, %v4211_v52 }
 0x9d0   : > { %v2105_v60 = vsel %vm999_vm6, %v2083_v28, %v2104_v33 }
 0x9d1   : > { %v2062_v16 = vpop.permute.xlu1 %2061  ;;  %v2065_v50 = vpop.permute.xlu0 %2064  ;;  %v2106_v12 = vsel %vm1001_vm7, %v2087_v22, %v2105_v60 }
 0x9d2   : > { %v2091_v1 = vrot.slane %v2062_v16, %v4211_v52  ;;  %v2095_v35 = vrot.slane %v2065_v50, %v4211_v52 }
 0x9d4   : > { %v2107_v5 = vsel %vm1003_vm8, %v2091_v1, %v2106_v12 }
 0x9d5   : > { %v2108_v21 = vsel %vm1005_vm9, %v2095_v35, %v2107_v5 }
 0x9d8   : > { %v2068_v9 = vpop.permute.xlu1 %2067 }
 0x9d9   : > { %v2099_v41 = vrot.slane %v2068_v9, %v4211_v52  ;;  %v2071_v30 = vpop.permute.xlu0 %2070 }
 0x9da   : > { %v2103_v43 = vrot.slane %v2071_v30, %v4211_v52 }
 0x9db   : > { %v2109_v0 = vsel %vm1007_vm10, %v2099_v41, %v2108_v21 }
 0x9dc   : > { %v2110_v42 = vsel %vm1009_vm11, %v2103_v43, %v2109_v0 }
 0x9dd   : > { %v2113_v55 = vsel %vm2112_vm15, %v2110_v42, -inf }
 0x9de   : > { %2114 = vmax.xlane.f32.xlu1 %v2113_v55 }
 0xa6b   : > { %v2115_v6 = vpop.xlane.xlu1 %2114 }
 0xa6c   : > { %v2120_v3 = vrot.slane %v2115_v6, %v4087_v20  ;;  %v2124_v63 = vrot.slane %v2115_v6, %v4274_v7  ;;  %v2128_v4 = vrot.slane %v2115_v6, %v4284_v25  ;;  %v2132_v51 = vrot.slane %v2115_v6, %v4304_v58 }
 0xa6d   : > { %v2136_v31 = vrot.slane %v2115_v6, %v4319_v23  ;;  %v2140_v24 = vrot.slane %v2115_v6, %v4279_v17  ;;  %v2148_v16 = vrot.slane %v2115_v6, %v4296_v38 }
 0xa6e   : > { %v2157_v54 = vsub.f32 %v2032_v59, %v2120_v3  ;;  %v2158_v15 = vsub.f32 %v2033_v8, %v2124_v63  ;;  %v2159_v45 = vsub.f32 %v2034_v47, %v2128_v4  ;;  %v2160_v39 = vsub.f32 %v2035_v10, %v2132_v51 }
 0xa6f   : > { %v2161_v56 = vsub.f32 %v2036_v49, %v2136_v31  ;;  %v2144_v59 = vrot.slane %v2115_v6, %v4288_v27  ;;  %v2162_v8 = vsub.f32 %v2037_v19, %v2140_v24  ;;  %v2164_v60 = vsub.f32 %v2039_v61, %v2148_v16 }
 0xa70   : > { %v2165_v34 = vmul.f32 1.442695, %v2157_v54  ;;  %v2167_v18 = vmul.f32 1.442695, %v2158_v15  ;;  %v2169_v37 = vmul.f32 1.442695, %v2159_v45 }
 0xa71   : > { %v2171_v53 = vmul.f32 1.442695, %v2160_v39  ;;  %v2173_v40 = vmul.f32 1.442695, %v2161_v56  ;;  %v2163_v33 = vsub.f32 %v2038_v29, %v2144_v59  ;;  %v2175_v10 = vmul.f32 1.442695, %v2162_v8 }
 0xa72   : > { %3438 = vpow2.f32 %v2165_v34  ;;  %v2179_v1 = vmul.f32 1.442695, %v2164_v60 }
 0xa73   : > { %3440 = vpow2.f32 %v2167_v18  ;;  %v2177_v49 = vmul.f32 1.442695, %v2163_v33 }
 0xa74   : > { %3442 = vpow2.f32 %v2169_v37 }
 0xa75   : > { %3444 = vpow2.f32 %v2171_v53 }
 0xa76   : > { %3446 = vpow2.f32 %v2173_v40 }
 0xa77   : > { %3448 = vpow2.f32 %v2175_v10 }
 0xa78   : > { %3450 = vpow2.f32 %v2177_v49 }
 0xa79   : > { %3452 = vpow2.f32 %v2179_v1 }
 0xa7c   : > { %v3439_v28 = vpop.eup %3438 }
 0xa7d   : > { %2190 = vperm.xlu0 %3393, %v3439_v28   ;;  %v3441_v47 = vpop.eup %3440 }
 0xa7e   : > { %v3443_v22 = vpop.eup %3442 }
 0xa7f   : > { %v3445_v50 = vpop.eup %3444 }
 0xa80   : > { %v3447_v35 = vpop.eup %3446 }
 0xa81   : > { %2193 = vperm.xlu0 %3393, %v3441_v47   ;;  %v3449_v19 = vpop.eup %3448 }
 0xa82   : > { %v3451_v12 = vpop.eup %3450 }
 0xa83   : > { %v3453_v5 = vpop.eup %3452 }
 0xa85   : > { %2196 = vperm.xlu0 %3393, %v3443_v22  }
 0xa89   : > { %2199 = vperm.xlu0 %3393, %v3445_v50  }
 0xa8d   : > { %2202 = vperm.xlu0 %3393, %v3447_v35  }
 0xa91   : > { %2205 = vperm.xlu0 %3393, %v3449_v19  }
 0xa95   : > { %2208 = vperm.xlu0 %3393, %v3451_v12  }
 0xa99   : > { %2211 = vperm.xlu0 %3393, %v3453_v5  }
 0xafc   : > { %v2191_v29 = vpop.permute.xlu0 %2190 }
 0xafd   : > { %v2216_v42 = vrot.slane %v2191_v29, %v4211_v52 }
 0xb00   : > { %v2194_v9 = vpop.permute.xlu0 %2193 }
 0xb01   : > { %v2220_v21 = vrot.slane %v2194_v9, %v4211_v52 }
 0xb03   : > { %v2245_v63 = vsel %vm997_vm5, %v2220_v21, %v2216_v42 }
 0xb04   : > { %v2197_v41 = vpop.permute.xlu0 %2196 }
 0xb05   : > { %v2224_v0 = vrot.slane %v2197_v41, %v4211_v52 }
 0xb07   : > { %v2246_v54 = vsel %vm999_vm6, %v2224_v0, %v2245_v63 }
 0xb08   : > { %v2200_v30 = vpop.permute.xlu0 %2199 }
 0xb09   : > { %v2228_v55 = vrot.slane %v2200_v30, %v4211_v52 }
 0xb0b   : > { %v2247_v34 = vsel %vm1001_vm7, %v2228_v55, %v2246_v54 }
 0xb0c   : > { %v2203_v61 = vpop.permute.xlu0 %2202 }
 0xb0d   : > { %v2232_v6 = vrot.slane %v2203_v61, %v4211_v52 }
 0xb0f   : > { %v2248_v51 = vsel %vm1003_vm8, %v2232_v6, %v2247_v34 }
 0xb10   : > { %v2206_v43 = vpop.permute.xlu0 %2205 }
 0xb11   : > { %v2236_v4 = vrot.slane %v2206_v43, %v4211_v52 }
 0xb13   : > { %v2249_v18 = vsel %vm1005_vm9, %v2236_v4, %v2248_v51 }
 0xb14   : > { %v2209_v3 = vpop.permute.xlu0 %2208 }
 0xb15   : > { %v2240_v15 = vrot.slane %v2209_v3, %v4211_v52 }
 0xb17   : > { %v2250_v39 = vsel %vm1007_vm10, %v2240_v15, %v2249_v18 }
 0xb18   : > { %v2212_v45 = vpop.permute.xlu0 %2211 }
 0xb19   : > { %v2244_v31 = vrot.slane %v2212_v45, %v4211_v52 }
 0xb1b   : > { %v2251_v37 = vsel %vm1009_vm11, %v2244_v31, %v2250_v39 }
 0xb1c   : > { %v2253_v24 = vsel %vm2112_vm15, %v2251_v37, 0.0 }
 0xb1d   : > { %2254 = vadd.xlane.f32.xlu0 %v2253_v24 }
 0xbaa   : > { %v2255_v56 = vpop.xlane.xlu0 %2254 }
 0xbab   : > { %3454 = vrcp.f32 %v2255_v56 }
 0xbb5   : > { %v3455_v53 = vpop.eup %3454 }
 0xbb6   : > { %v2281_v59 = vrot.slane %v3455_v53, %v4279_v17  ;;  %v2261_v8 = vrot.slane %v3455_v53, %v4087_v20  ;;  %v2265_v33 = vrot.slane %v3455_v53, %v4274_v7  ;;  %v2269_v10 = vrot.slane %v3455_v53, %v4284_v25  ;;  %v2410_v25 = vld [vmem:[%s4937_s19 + $0x20] sm:$0xff] }
 0xbb7   : > { %v2273_v49 = vrot.slane %v3455_v53, %v4304_v58  ;;  %v2277_v29 = vrot.slane %v3455_v53, %v4319_v23  ;;  %v2289_v7 = vrot.slane %v3455_v53, %v4296_v38  ;;  %v2411_v58 = vld [vmem:[%s4937_s19 + $0x28] sm:$0xff]  ;;  %v2412_v23 = vld [vmem:[%s4937_s19 + $0x30] sm:$0xff]  ;;  %v2413_v38 = vld [vmem:[%s4937_s19 + $0x38] sm:$0xff] }
 0xbb8   : > { %v2303_v40 = vmul.f32 %v3449_v19, %v2281_v59  ;;  %v2298_v16 = vmul.f32 %v3439_v28, %v2261_v8  ;;  %v2299_v52 = vmul.f32 %v3441_v47, %v2265_v33  ;;  %v2300_v60 = vmul.f32 %v3443_v22, %v2269_v10 }
 0xbb9   : > { %v2301_v1 = vmul.f32 %v3445_v50, %v2273_v49  ;;  %v2302_v17 = vmul.f32 %v3447_v35, %v2277_v29  ;;  %v2285_v19 = vrot.slane %v3455_v53, %v4288_v27  ;;  %v2305_v47 = vmul.f32 %v3453_v5, %v2289_v7 }
 0xbba   : > { %2333 = vperm.xlu0 %3393, %v2303_v40   ;;  %2308 = vperm.xlu1 %3392, %v2298_v16   ;;  %v3271_v27 = vpack.c.bf16 %v2411_v58, %v2410_v25  ;;  %v3274_v22 = vpack.c.bf16 %v2413_v38, %v2412_v23 }
 0xbbb   : > { %v2304_v28 = vmul.f32 %v3451_v12, %v2285_v19 }
 0xbbc   : > { %3272 = vmatpush3.bf16.msra.mxu1 %v3271_v27 }
 0xbbd   : > { %3273 = vmatprep.subr.bf16.mxu1 %v4932_v13 }
 0xbbe   : > { %2313 = vperm.xlu1 %3392, %v2299_v52  }
 0xbc0   : > { %3275 = vmatpush3.bf16.msra.mxu1 %v3274_v22 }
 0xbc2   : > { %2318 = vperm.xlu1 %3392, %v2300_v60  }
 0xbc6   : > { %2323 = vperm.xlu1 %3392, %v2301_v1  }
 0xbca   : > { %2328 = vperm.xlu1 %3392, %v2302_v17  }
 0xbce   : > { %2338 = vperm.xlu1 %3392, %v2304_v28  }
 0xbd2   : > { %2343 = vperm.xlu1 %3392, %v2305_v47  }
 0xc39   : > { %v2309_v50 = vpop.permute.xlu1 %2308  ;;  %v2334_v5 = vpop.permute.xlu0 %2333 }
 0xc3a   : > { %v2346_v35 = vmul.f32 %v2309_v50, %v4607_v14  ;;  %v2351_v61 = vmul.f32 %v2334_v5, %v4641_v62 }
 0xc3c   : > { %v2354_v41 = vsel %vm676_vm2, %v2346_v35, 0.0  ;;  %v2389_v6 = vsel %vm676_vm2, %v2351_v61, 0.0 }
 0xc3d   : > { %v2314_v12 = vpop.permute.xlu1 %2313  ;;  %v2355_v42 = vrot.slane %v2354_v41, 4  ;;  %v2390_v15 = vrot.slane %v2389_v6, 4 }
 0xc3e   : > { %v2347_v9 = vmul.f32 %v2314_v12, %v4614_v26 }
 0xc3f   : > { %v2356_v4 = vadd.f32 %v2355_v42, %v2354_v41  ;;  %v2391_v37 = vadd.f32 %v2390_v15, %v2389_v6  ;;  %v2576_v15 = vld [vmem:[#allocation12 + $0x20] sm:$0xff] }
 0xc40   : > { %v2361_v30 = vsel %vm676_vm2, %v2347_v9, 0.0 }
 0xc41   : > { %v2362_v43 = vrot.slane %v2361_v30, 4  ;;  %v2319_v21 = vpop.permute.xlu1 %2318  ;;  %v2357_v31 = vrot.slane %v2356_v4, 2  ;;  %v2392_v10 = vrot.slane %v2391_v37, 2 }
 0xc42   : > { %v2348_v0 = vmul.f32 %v2319_v21, %v4628_v11 }
 0xc43   : > { %v2363_v14 = vadd.f32 %v2362_v43, %v2361_v30  ;;  %v2358_v16 = vadd.f32 %v2357_v31, %v2356_v4  ;;  %v2393_v58 = vadd.f32 %v2392_v10, %v2391_v37 }
 0xc44   : > { %v2368_v55 = vsel %vm676_vm2, %v2348_v0, 0.0 }
 0xc45   : > { %v2369_v3 = vrot.slane %v2368_v55, 4  ;;  %v2324_v63 = vpop.permute.xlu1 %2323  ;;  %v2364_v62 = vrot.slane %v2363_v14, 2  ;;  %v2359_v28 = vrot.slane %v2358_v16, 1  ;;  %v2394_v30 = vrot.slane %v2393_v58, 1 }
 0xc46   : > { %v2349_v26 = vmul.f32 %v2324_v63, %v4623_v36 }
 0xc47   : > { %v2370_v54 = vadd.f32 %v2369_v3, %v2368_v55  ;;  %v2365_v56 = vadd.f32 %v2364_v62, %v2363_v14  ;;  %v2360_v35 = vadd.f32 %v2359_v28, %v2358_v16  ;;  %v2395_v14 = vadd.f32 %v2394_v30, %v2393_v58  ;;  %v2578_v62 = vld [vmem:[#allocation12 + $0x30] sm:$0xff]  ;;  %v2657_v28 = vld [vmem:[%s4040_s4 + $0x20] sm:$0xff] }
 0xc48   : > { %v2375_v34 = vsel %vm676_vm2, %v2349_v26, 0.0 }
 0xc49   : > { %v2376_v51 = vrot.slane %v2375_v34, 4  ;;  %v2329_v45 = vpop.permute.xlu1 %2328  ;;  %v2371_v18 = vrot.slane %v2370_v54, 2  ;;  %v2366_v49 = vrot.slane %v2365_v56, 1 }
 0xc4a   : > { %v2350_v11 = vmul.f32 %v2329_v45, %v4646_v48  ;;  %v2579_v45 = vld [vmem:[#allocation12 + $0x38] sm:$0xff] }
 0xc4b   : > { %v2377_v39 = vadd.f32 %v2376_v51, %v2375_v34  ;;  %v2372_v8 = vadd.f32 %v2371_v18, %v2370_v54  ;;  %v2367_v23 = vadd.f32 %v2366_v49, %v2365_v56  ;;  %v2577_v34 = vld [vmem:[#allocation12 + $0x28] sm:$0xff]  ;;  %v3280_v18 = vpack.c.bf16 %v2579_v45, %v2578_v62 }
 0xc4c   : > { %v2382_v24 = vsel %vm676_vm2, %v2350_v11, 0.0  ;;  %v3277_v51 = vpack.c.bf16 %v2577_v34, %v2576_v15 }
 0xc4d   : > { %v2378_v53 = vrot.slane %v2377_v39, 2  ;;  %v2383_v59 = vrot.slane %v2382_v24, 4  ;;  %v2339_v36 = vpop.permute.xlu1 %2338  ;;  %v2373_v17 = vrot.slane %v2372_v8, 1 }
 0xc4e   : > { %v2352_v40 = vmul.f32 %v2339_v36, %v4662_v32  ;;  %3278 = vmatpush3.bf16.msra.mxu0 %v3277_v51 }
 0xc4f   : > { %v2379_v33 = vadd.f32 %v2378_v53, %v2377_v39  ;;  %v2384_v52 = vadd.f32 %v2383_v59, %v2382_v24  ;;  %v2374_v50 = vadd.f32 %v2373_v17, %v2372_v8  ;;  %3279 = vmatprep.subr.bf16.mxu0 %v4932_v13 }
 0xc50   : > { %v2396_v60 = vsel %vm676_vm2, %v2352_v40, 0.0 }
 0xc51   : > { %v2385_v48 = vrot.slane %v2384_v52, 2  ;;  %v2397_v1 = vrot.slane %v2396_v60, 4  ;;  %v2344_v29 = vpop.permute.xlu1 %2343  ;;  %v2380_v7 = vrot.slane %v2379_v33, 1 }
 0xc52   : > { %v2353_v19 = vmul.f32 %v2344_v29, %v4656_v57  ;;  %v2496_v57 = vsel %vm997_vm5, %v2367_v23, %v2360_v35  ;;  %3281 = vmatpush3.bf16.msra.mxu0 %v3280_v18  ;;  %v2659_v35 = vld [vmem:[%s4040_s4 + $0x30] sm:$0xff] }
 0xc53   : > { %v2386_v47 = vadd.f32 %v2385_v48, %v2384_v52  ;;  %v2398_v25 = vadd.f32 %v2397_v1, %v2396_v60  ;;  %v2381_v12 = vadd.f32 %v2380_v7, %v2379_v33  ;;  %v2497_v21 = vsel %vm999_vm6, %v2374_v50, %v2496_v57  ;;  %v2653_v33 = vld [vmem:[%s4040_s4] sm:$0xff]  ;;  %v2654_v60 = vld [vmem:[%s4040_s4 + $0x8] sm:$0xff]  ;;  %v2655_v48 = vld [vmem:[%s4040_s4 + $0x10] sm:$0xff] }
 0xc54   : > { %v2403_v32 = vsel %vm676_vm2, %v2353_v19, 0.0  ;;  %v2658_v57 = vld [vmem:[%s4040_s4 + $0x28] sm:$0xff] }
 0xc55   : > { %v2387_v27 = vrot.slane %v2386_v47, 1  ;;  %v2399_v38 = vrot.slane %v2398_v25, 2  ;;  %v2404_v22 = vrot.slane %v2403_v32, 4  ;;  %v2498_v0 = vsel %vm1001_vm7, %v2381_v12, %v2497_v21 }
 0xc57   : > { %v2400_v5 = vadd.f32 %v2399_v38, %v2398_v25  ;;  %v2405_v9 = vadd.f32 %v2404_v22, %v2403_v32  ;;  %v2388_v41 = vadd.f32 %v2387_v27, %v2386_v47  ;;  %v2656_v22 = vld [vmem:[%s4040_s4 + $0x18] sm:$0xff] }
 0xc59   : > { %v2401_v61 = vrot.slane %v2400_v5, 1  ;;  %v2406_v43 = vrot.slane %v2405_v9, 2  ;;  %v2499_v55 = vsel %vm1003_vm8, %v2388_v41, %v2498_v0 }
 0xc5a   : > { %v2500_v26 = vsel %vm1005_vm9, %v2395_v14, %v2499_v55 }
 0xc5b   : > { %v2407_v42 = vadd.f32 %v2406_v43, %v2405_v9  ;;  %v2402_v6 = vadd.f32 %v2401_v61, %v2400_v5 }
 0xc5d   : > { %v2408_v3 = vrot.slane %v2407_v42, 1  ;;  %v2501_v4 = vsel %vm1007_vm10, %v2402_v6, %v2500_v26  ;;  %v4942_v26 = vld [vmem:[#allocation21_spill] sm:$0xff] }
 0xc5f   : > { %v2409_v63 = vadd.f32 %v2408_v3, %v2407_v42  ;;  %v2660_v42 = vld [vmem:[%s4040_s4 + $0x38] sm:$0xff]  ;;  %v4941_v3 = vld [vmem:[#allocation26_spill] sm:$0xff]  ;;  %s3085_s4 = sshll.u32 %s3688_s16, 7  ;;  %s2850_s16 = scalar_lea.sflag [#allocation6], %s4028_s9 }
 0xc60   : > { %s4811_s11 = scalar_lea.hbm %s4943_s13, %s3085_s4 }
 0xc61   : > { %v2502_v54 = vsel %vm1009_vm11, %v2409_v63, %v2501_v4  ;;  %v2801_v63 = vadd.s32 4294967200, %v4941_v3 }
 0xc62   : > { %3218 = vmatmul.mubr.msk.f32.vlgmr.msra.gmra.mrb[6].mxu1 %vm676_vm2, %v2502_v54 }
 0xc63   : > { %v2804_v4 = vsub.s32 %v2801_v63, %v4942_v26 }
 0xd35   : > { %v2571_v11 = vpop.f32.mrb[6].mxu1 }
 0xd36   : > { %3456 = vtanh.f32 %v2571_v11  ;;  %v3219_v31 = vpop.f32.mrb[7].mxu1 }
 0xd40   : > { %v3457_v39 = vpop.eup %3456 }
 0xd41   : > { %3229 = vmatmul.mubr.msk.f32.vlgmr.msra.gmra.mrb[6].mxu0 %vm676_vm2, %v3457_v39 }
 0xe14   : > { %v2649_v37 = vpop.f32.mrb[6].mxu0 }
 0xe15   : > { %v2662_v24 = vcombine.high %v2649_v37, %v2649_v37  ;;  %v2669_v56 = vrot.slane %v2649_v37, %v4939_v2  ;;  %v3230_v53 = vpop.f32.mrb[7].mxu0 }
 0xe17   : > { %v2676_v59 = vrot.slane %v2662_v24, %v4939_v2  ;;  %v2677_v36 = vcombine.high %v2669_v56, %v2669_v56  ;;  %v2685_v13 = vrot.slane %v2669_v56, %v4939_v2 }
 0xe19   : > { %v2692_v8 = vrot.slane %v2676_v59, %v4939_v2  ;;  %v2699_v40 = vrot.slane %v2677_v36, %v4939_v2  ;;  %v2707_v16 = vcombine.high %v2685_v13, %v2685_v13  ;;  %v2678_v52 = vcombine.high %v2676_v59, %v2676_v59 }
 0xe1a   : > { %v2714_v10 = vrot.slane %v2685_v13, %v4087_v20 }
 0xe1b   : > { %v2718_v49 = vrot.slane %v2699_v40, %v4087_v20  ;;  %v2722_v1 = vrot.slane %v2707_v16, %v4087_v20  ;;  %v2730_v29 = vrot.slane %v2692_v8, %v4087_v20  ;;  %v2709_v17 = vcombine.high %v2699_v40, %v2699_v40 }
 0xe1c   : > { %v2751_v19 = vmul.f32 %v2714_v10, %v2653_v33  ;;  %v2708_v7 = vcombine.high %v2692_v8, %v2692_v8  ;;  %v2706_v23 = vrot.slane %v2678_v52, %v4939_v2  ;;  %v2842_v52 = vsel %vm676_vm2, %v4588_v44, %v4538_v46 }
 0xe1d   : > { %v2752_v47 = vmul.f32 %v2718_v49, %v2654_v60  ;;  %v2753_v58 = vmul.f32 %v2722_v1, %v2655_v48  ;;  %v2726_v32 = vrot.slane %v2709_v17, %v4087_v20  ;;  %v2755_v38 = vmul.f32 %v2730_v29, %v2657_v28 }
 0xe1e   : > { %v2759_v25 = vsel %vm856_vm3, %v2751_v19, 0.0  ;;  %v2738_v50 = vrot.slane %v2708_v7, %v4087_v20  ;;  %v2734_v9 = vrot.slane %v2706_v23, %v4087_v20  ;;  %v2710_v41 = vcombine.high %v2706_v23, %v2706_v23 }
 0xe1f   : > { %2760 = vadd.xlane.f32.xlu1 %v2759_v25  ;;  %v2762_v27 = vsel %vm856_vm3, %v2752_v47, 0.0  ;;  %v2765_v12 = vsel %vm856_vm3, %v2753_v58, 0.0  ;;  %v2754_v5 = vmul.f32 %v2726_v32, %v2656_v22  ;;  %v2771_v30 = vsel %vm856_vm3, %v2755_v38, 0.0 }
 0xe20   : > { %2763 = vadd.xlane.f32.xlu0 %v2762_v27  ;;  %v2757_v2 = vmul.f32 %v2738_v50, %v2659_v35  ;;  %v2756_v43 = vmul.f32 %v2734_v9, %v2658_v57  ;;  %v2742_v21 = vrot.slane %v2710_v41, %v4087_v20 }
 0xe21   : > { %v2768_v61 = vsel %vm856_vm3, %v2754_v5, 0.0 }
 0xe22   : > { %v2777_v0 = vsel %vm856_vm3, %v2757_v2, 0.0  ;;  %v2774_v55 = vsel %vm856_vm3, %v2756_v43, 0.0  ;;  %v2758_v6 = vmul.f32 %v2742_v21, %v2660_v42 }
 0xe23   : > { %2766 = vadd.xlane.f32.xlu1 %v2765_v12 }
 0xe24   : > { %2772 = vadd.xlane.f32.xlu0 %v2771_v30  ;;  %v2780_v14 = vsel %vm856_vm3, %v2758_v6, 0.0 }
 0xe27   : > { %2769 = vadd.xlane.f32.xlu1 %v2768_v61 }
 0xe28   : > { %2778 = vadd.xlane.f32.xlu0 %v2777_v0 }
 0xe2b   : > { %2775 = vadd.xlane.f32.xlu1 %v2774_v55 }
 0xe2f   : > { %2781 = vadd.xlane.f32.xlu1 %v2780_v14 }
 0xe3e   : > { %2790 = vrot.lane.b32.xlu0 %v3457_v39, %s3711_s29  ;;  %s2864_s29 = sshll.u32 %s4062_s25, 4  ;;  %s4813_s29 = int_to_ptr.vmem [resolvable:$true] %s2864_s29 }
 0xe3f   : > { %s3602_s28 = scalar_lea.vmem %s4813_s29, 128  ;;  %p3609_p5 = scmp.lt.s32.totalorder %s4813_s29, %s3607_s6 }
 0xe40   : > { %2786 = vrot.lane.b32.xlu1 %v4538_v46, %s3712_s27  ;;  %p3603_p1 = scmp.ne.s32.totalorder %s4813_s29, %s3602_s28  ;;  %p3610_p10 = scmp.lt.s32.totalorder %s3608_s23, %s3602_s28 }
 0xe42   : > { %p3604_p12 = pnand %p3603_p1, %p3921_p0  ;;  %p3611_p11 = por %p3610_p10, %p3609_p5 }
 0xe44   : > { %p3605_p3 = pneg %p3604_p12 }
 0xe46   : > { %p3612_p6 = pnand %p3611_p11, %p3605_p3 }
 0xeac   : > { %v2761_v20 = vpop.xlane.xlu1 %2760 }
 0xead   : > { %v2764_v54 = vpop.xlane.xlu0 %2763  ;;  %v2805_v62 = vrot.slane %v2761_v20, %v2804_v4 }
 0xeae   : > { %v2809_v15 = vrot.slane %v2764_v54, %v2804_v4 }
 0xeb0   : > { %v2767_v34 = vpop.xlane.xlu1 %2766  ;;  %v2834_v18 = vsel %vm997_vm5, %v2809_v15, %v2805_v62 }
 0xeb1   : > { %v2773_v51 = vpop.xlane.xlu0 %2772  ;;  %v2813_v45 = vrot.slane %v2767_v34, %v2804_v4 }
 0xeb2   : > { %v2821_v56 = vrot.slane %v2773_v51, %v2804_v4 }
 0xeb3   : > { %v2835_v39 = vsel %vm999_vm6, %v2813_v45, %v2834_v18 }
 0xeb4   : > { %v2770_v11 = vpop.xlane.xlu1 %2769 }
 0xeb5   : > { %v2817_v31 = vrot.slane %v2770_v11, %v2804_v4  ;;  %v2779_v37 = vpop.xlane.xlu0 %2778 }
 0xeb6   : > { %v2829_v8 = vrot.slane %v2779_v37, %v2804_v4 }
 0xeb7   : > { %v2836_v24 = vsel %vm1001_vm7, %v2817_v31, %v2835_v39 }
 0xeb8   : > { %v2776_v53 = vpop.xlane.xlu1 %2775  ;;  %v2837_v36 = vsel %vm1003_vm8, %v2821_v56, %v2836_v24 }
 0xeb9   : > { %v2825_v59 = vrot.slane %v2776_v53, %v2804_v4  ;;  %v2791_v40 = vpop.permute.xlu0 %2790 }
 0xeba   : > { %v2843_v60 = vsel %vm856_vm3, %v2842_v52, %v2791_v40 }
 0xebb   : > { %v2838_v13 = vsel %vm1005_vm9, %v2825_v59, %v2837_v36 }
 0xebc   : > { %v2782_v16 = vpop.xlane.xlu1 %2781  ;;  %v2839_v10 = vsel %vm1007_vm10, %v2829_v8, %v2838_v13 }
 0xebd   : > { %v2833_v33 = vrot.slane %v2782_v16, %v2804_v4 }
 0xebf   : > { %v2840_v49 = vsel %vm1009_vm11, %v2833_v33, %v2839_v10 }
 0xec0   : > { %v2787_v48 = vpop.permute.xlu1 %2786  ;;  %v2845_v1 = vsel %vm2844_vm0, %v2843_v60, %v2840_v49 }
 0xec1   : > { %2789 = vst.msk [vmem:[#allocation3] sm:$0xff] %vm676_vm2, %v2787_v48  ;;  %v2847_v46 = vsel %vm2846_vm1, %v2845_v1, 0.0 }
 0xec2   : > { %2848 = vst [vmem:[%s4062_s25] sm:$0xff] %v2847_v46 }
 0xec3   : > { %3615 = shalt.err (!%p3612_p6)
}
 0xec4   : > { %s3616_s9 = scalar_lea.hbm %s4811_s11, 128  ;;  %s3620_s20 = scalar_lea.hbm %s4944_s10, 768 }
 0xec5   : > { %p3617_p7 = scmp.ne.s32.totalorder %s4811_s11, %s3616_s9  ;;  %p3621_p2 = scmp.lt.u32.totalorder %s4811_s11, %s4944_s10 }
 0xec6   : > { %p3622_p4 = scmp.lt.u32.totalorder %s3620_s20, %s3616_s9  ;;  %p3624_p1 = scmp.lt.u32.totalorder %s3616_s9, %s4811_s11 }
 0xec7   : > { %p3618_p9 = pnand %p3617_p7, %p3921_p0 }
 0xec8   : > { %p3623_p8 = por %p3622_p4, %p3621_p2 }
 0xec9   : > { %p3619_p13 = pneg %p3618_p9 }
 0xeca   : > { %p3625_p12 = por %p3624_p1, %p3623_p8 }
 0xecc   : > { %p3626_p3 = pnand %p3625_p12, %p3619_p13 }
 0xece   : > { %3629 = shalt.err (!%p3626_p3)
}
 0xecf   : > { %3300 = dma.vmem_to_hbm [thread:$0]  (%p3921_p0), %s4813_s29, 128, %s4811_s11, %s2850_s16  }
 0xed0 PF: > { %s4945_s27 = sld [smem:[#allocation19_spill]]  ;;  %s4946_s4 = sld [smem:[#allocation20_spill]] }
 0xed1   : > { %p3330_p5 = scmp.ge.s32.totalorder %s3696_s18, 2 }
 0xed6   : > { %s2876_s3 = sand.u32 1, %s4945_s27   ;;  %p4947_p10 = scmp.ne.s32.totalorder %s4946_s4, 0 }
 0xed7   : > { %s2877_s30 = scalar_lea.sflag [#allocation6], %s2876_s3 }
 0xed8   : > { %p3320_p11 = pnand %p3330_p5, %p4947_p10 }
 0xeda   : > { %3671 = dma.done.wait (!%p3320_p11), %s2877_s30, 128  }
 0xedb   : > { %3673 = vsyncadd (!%p3320_p11), %s2877_s30, 4294967168  ;;  %s30_s18 = sadd.s32 1, %s3696_s18   ;;  %s4948_s13 = smov %s3680_s14 }
 0xedc   : > { %p27_p6 = scmp.ge.s32.totalorder %s30_s18, 8   ;;  %s4949_s14 = smov %s3684_s15 }
 0xedd   : > { %s4950_s15 = smov %s3936_s24  ;;  %s4951_s16 = smov %s3692_s17 }
 0xede   : > { %s4952_s17 = smov %s4954_s26  ;;  %29 = sbr.rel (!%p27_p6) target bundleno = 18 (0x12), region = 145 }
 0xee5   :  { %2882 = vsyncpa [#allocation5], 1 }
 0xee6   :  { %2884 = vsyncpa [#allocation5 + $0x1], 1 }
 0xee7   :  { %2885 = vsyncpa [#allocation8], 1 }
 0xee8   :  { %2887 = vsyncpa [#allocation8 + $0x1], 1 }
 0xee9   :  { %2888 = vsyncpa [#allocation11], 1 }
 0xeea   :  { %2889 = vsyncpa [#allocation6], 1 }
 0xeeb   :  { %2891 = vsyncpa [#allocation6 + $0x1], 1 }

</bundles_post_ra>
